<compile_context>
chip_gen: v6e
topology: v6e:2x2x1
jax: 0.10.0
libtpu: 0.0.40
codegen_flags: <defaults>
</compile_context>

<pallas_src>
import numpy as np
import jax
import jax.numpy as jnp
from jax import lax
from jax.experimental import pallas as pl
from jax.experimental.pallas import tpu as pltpu


def _make_kernel(stage, H):
    """Fused back-projection kernel operating on flat (N*H, W*C) slabs."""

    def conv3x3(x2d, top_ok, bot_ok, m_ref, b_ref):
        # x2d:   (NH, WC) f32 activations.
        # m_ref: (3*WC, WC) bf16 concatenated tap matrix: rows [0:WC] act on the
        #        dh=-1 shifted rows, [WC:2WC] on dh=0, [2WC:3WC] on dh=+1
        #        (horizontal taps + horizontal zero padding folded into bands).
        # b_ref: (1, WC) f32 pre-tiled bias.
        nh = x2d.shape[0]
        # Vertical neighbours via XLU sublane rolls; per-image zero padding via
        # the precomputed boundary masks (roll wrap-around rows are masked).
        x_dn = jnp.where(top_ok, pltpu.roll(x2d, shift=1, axis=0), 0.0)       # row r -> x[r-1]
        x_up = jnp.where(bot_ok, pltpu.roll(x2d, shift=nh - 1, axis=0), 0.0)  # row r -> x[r+1]
        xcat = jnp.concatenate([x_dn, x2d, x_up], axis=1).astype(jnp.bfloat16)
        acc = jnp.dot(xcat, m_ref[...], preferred_element_type=jnp.float32)
        return acc + b_ref[...]

    def make_masks(nh, wc):
        # Rows whose dh=-1 / dh=+1 neighbour lies inside the same image.
        row = lax.broadcasted_iota(jnp.int32, (nh, wc), 0)
        rmod = row % H
        return rmod != 0, rmod != (H - 1)

    if stage > 1:
        def kernel(x_ref, m0_ref, b0_ref, m1_ref, b1_ref,
                   m2_ref, b2_ref, m3_ref, b3_ref, out_ref):
            nh, wc = out_ref.shape
            top_ok, bot_ok = make_masks(nh, wc)     # computed once, reused 3x
            # init_conv: 1x1 conv folded into one (W*Cin, W*C) block-diag matmul.
            x = jnp.dot(x_ref[...].astype(jnp.bfloat16), m0_ref[...],
                        preferred_element_type=jnp.float32) + b0_ref[...]
            h0 = conv3x3(x, top_ok, bot_ok, m1_ref, b1_ref)
            l0 = conv3x3(h0, top_ok, bot_ok, m2_ref, b2_ref)
            h1 = conv3x3(l0 - x, top_ok, bot_ok, m3_ref, b3_ref)
            out_ref[...] = (h1 + h0).astype(out_ref.dtype)
    else:
        def kernel(x_ref, m1_ref, b1_ref, m2_ref, b2_ref,
                   m3_ref, b3_ref, out_ref):
            nh, wc = out_ref.shape
            top_ok, bot_ok = make_masks(nh, wc)
            x = x_ref[...].astype(jnp.float32)      # stage == 1 requires Cin == C
            h0 = conv3x3(x, top_ok, bot_ok, m1_ref, b1_ref)
            l0 = conv3x3(h0, top_ok, bot_ok, m2_ref, b2_ref)
            h1 = conv3x3(l0 - x, top_ok, bot_ok, m3_ref, b3_ref)
            out_ref[...] = (h1 + h0).astype(out_ref.dtype)

    return kernel


def prepare_params(params, W, stage):
    """One-time host-side restructuring of weights into matmul-friendly form.

    * Each (3,3,C,C) HWIO kernel -> one (3*W*C, W*C) bf16 matrix: the three
      vertical taps are stacked along K (to pair with the in-kernel
      [x_dn | x | x_up] lane concatenation) and the 3 horizontal taps plus
      horizontal zero padding are folded into the band structure.
    * Biases -> (1, W*C) f32 tiled rows (broadcast over the flat row dim).
    * The 1x1 init conv -> (W*Cin, W*C) bf16 block-diagonal matrix.

    TODO(synk): at production sizes (large W*C) the dense banded slab is ~W/3x
    redundant and must be tiled along the output-W axis (grid dim + row-band
    weight loads) instead of materialized whole.
    """
    prep = {}
    if stage > 1:
        w0 = np.asarray(params['w0'], np.float32)              # (Cin, C)
        Cin, C = w0.shape
        m0 = np.zeros((W * Cin, W * C), np.float32)
        for w in range(W):
            m0[w * Cin:(w + 1) * Cin, w * C:(w + 1) * C] = w0
        prep['m0'] = jnp.asarray(m0, jnp.bfloat16)
        b0 = np.asarray(params['b0'], np.float32).reshape(1, C)
        prep['b0'] = jnp.asarray(np.tile(b0, (1, W)))
    for name in ('1', '2', '3'):
        w_hwio = np.asarray(params['w' + name], np.float32)    # (3, 3, C, C)
        C = w_hwio.shape[-1]
        WC = W * C
        mcat = np.zeros((3 * WC, WC), np.float32)
        for kh in range(3):            # vertical tap dh = kh - 1 (K block kh)
            for kw in range(3):        # horizontal tap dw = kw - 1
                dw = kw - 1
                for w in range(W):
                    wp = w + dw
                    if 0 <= wp < W:    # horizontal zero padding baked in
                        mcat[kh * WC + wp * C: kh * WC + (wp + 1) * C,
                             w * C:(w + 1) * C] = w_hwio[kh, kw]
        prep['m' + name] = jnp.asarray(mcat, jnp.bfloat16)
        b = np.asarray(params['b' + name], np.float32).reshape(1, C)
        prep['b' + name] = jnp.asarray(np.tile(b, (1, W)))
    return prep


def back_projection_block(x_nhwc, prep, stage):
    """x_nhwc: (N, H, W, Cin) float32.  Returns (N, H, W, C) float32."""
    N, H, W, Cin = x_nhwc.shape
    WC = prep['m1'].shape[-1]
    C = WC // W
    NH = N * H

    # Flat, lane-dense layout at the pallas_call boundary (free reshape).
    x2d = x_nhwc.reshape(NH, W * Cin)

    kernel = _make_kernel(stage, H)

    args = [x2d]
    if stage > 1:
        args += [prep['m0'], prep['b0']]
    args += [prep['m1'], prep['b1'], prep['m2'], prep['b2'],
             prep['m3'], prep['b3']]

    # Whole-array VMEM residency, no grid: no pipeline prologue, no double
    # buffering of the weights (footprint ~1.3 MB, far under VMEM).
    vmem_spec = pl.BlockSpec(memory_space=pltpu.MemorySpace.VMEM)

    flops = 2 * NH * (W * Cin) * WC + 3 * (2 * NH * (3 * WC) * WC)
    bytes_accessed = int(sum(int(np.prod(a.shape)) * a.dtype.itemsize for a in args)
                         + NH * WC * 4)

    out2d = pl.pallas_call(
        kernel,
        out_shape=jax.ShapeDtypeStruct((NH, WC), jnp.float32),
        in_specs=[vmem_spec] * len(args),
        out_specs=vmem_spec,
        cost_estimate=pl.CostEstimate(flops=flops, transcendentals=0,
                                      bytes_accessed=bytes_accessed),
        # TODO(synk): at real sizes, add a leading 'parallel' grid axis over
        # images (block (H, WC), dimension_semantics=('parallel',)) so v7x's
        # second TensorCore is engaged; roll+mask keeps each per-image block
        # self-contained so no cross-image shift handling is needed.
    )(*args)

    return out2d.reshape(N, H, W, C)


def reference(x_nhwc, params, stage):
    """Pure-JAX reference (XLA convs, f32 weights) for correctness checking."""
    def conv3x3(x, w, b):
        y = jax.lax.conv_general_dilated(
            x, w, window_strides=(1, 1), padding='SAME',
            dimension_numbers=('NHWC', 'HWIO', 'NHWC'))
        return y + b.reshape(1, 1, 1, -1)

    if stage > 1:
        x = jnp.einsum('nhwc,co->nhwo', x_nhwc, params['w0'])
        x = x + params['b0'].reshape(1, 1, 1, -1)
    else:
        x = x_nhwc
    h0 = conv3x3(x, params['w1'], params['b1'])
    l0 = conv3x3(h0, params['w2'], params['b2'])
    h1 = conv3x3(l0 - x, params['w3'], params['b3'])
    return h1 + h0


if __name__ == "__main__":
    key = jax.random.PRNGKey(0)
    N, Cin, H, W, C = 2, 4, 16, 16, 16
    stage = 2  # stage > 1 -> init_conv path is exercised

    ks = jax.random.split(key, 9)
    params = {
        'w0': 0.1 * jax.random.normal(ks[0], (Cin, C), jnp.float32),      # init_conv 1x1 (IO)
        'b0': 0.1 * jax.random.normal(ks[1], (1, 1, C), jnp.float32),
        'w1': 0.1 * jax.random.normal(ks[2], (3, 3, C, C), jnp.float32),  # conv1 (HWIO)
        'b1': 0.1 * jax.random.normal(ks[3], (1, 1, C), jnp.float32),
        'w2': 0.1 * jax.random.normal(ks[4], (3, 3, C, C), jnp.float32),  # conv2 (HWIO)
        'b2': 0.1 * jax.random.normal(ks[5], (1, 1, C), jnp.float32),
        'w3': 0.1 * jax.random.normal(ks[6], (3, 3, C, C), jnp.float32),  # conv3 (HWIO)
        'b3': 0.1 * jax.random.normal(ks[7], (1, 1, C), jnp.float32),
    }
    prep = prepare_params(params, W, stage)   # one-time host-side restructuring

    # PyTorch-style NCHW input, transposed to the kernel's NHWC layout.
    x_nchw = jax.random.normal(ks[8], (N, Cin, H, W), jnp.float32)
    x_nhwc = jnp.transpose(x_nchw, (0, 2, 3, 1))

    out = back_projection_block(x_nhwc, prep, stage)
    out = jax.block_until_ready(out)

    ref = reference(x_nhwc, params, stage)
    max_err = float(jnp.max(jnp.abs(out - ref)))
    # bf16 weights/activations feeding f32-accumulated MXU dots -> loosened tol
    # vs the previous all-f32 version (1e-4); structural bugs give errors >0.1.
    assert jnp.allclose(out, ref, atol=5e-2, rtol=5e-2), f"max_err={max_err}"
    print("KERNEL_OK")
</pallas_src>

<mosaic_0001>
module attributes {stable_mosaic.version = 11 : i64} {
  func.func @kernel(%arg0: memref<32x64xf32, #tpu.memory_space<vmem>>, %arg1: memref<64x256xbf16, #tpu.memory_space<vmem>>, %arg2: memref<1x256xf32, #tpu.memory_space<vmem>>, %arg3: memref<768x256xbf16, #tpu.memory_space<vmem>>, %arg4: memref<1x256xf32, #tpu.memory_space<vmem>>, %arg5: memref<768x256xbf16, #tpu.memory_space<vmem>>, %arg6: memref<1x256xf32, #tpu.memory_space<vmem>>, %arg7: memref<768x256xbf16, #tpu.memory_space<vmem>>, %arg8: memref<1x256xf32, #tpu.memory_space<vmem>>, %arg9: memref<32x256xf32, #tpu.memory_space<vmem>>) attributes {dimension_semantics = [], scalar_prefetch = 0 : i64, scratch_operands = 0 : i64, tpu.core_type = #tpu.core_type<tc>} {
    %0 = tpu.iota {dimensions = array<i32: 0>} : vector<32x256xi32>
    %c16_i32 = arith.constant 16 : i32
    %c0_i32 = arith.constant 0 : i32
    %1 = arith.cmpi eq, %c16_i32, %c0_i32 : i32
    %c1_i32 = arith.constant 1 : i32
    %2 = arith.select %1, %c1_i32, %c16_i32 : i32
    %3 = vector.broadcast %2 : i32 to vector<32x256xi32>
    %4 = arith.remsi %0, %3 : vector<32x256xi32>
    %c0_i32_0 = arith.constant 0 : i32
    %5 = vector.broadcast %c0_i32_0 : i32 to vector<32x256xi32>
    %6 = arith.cmpi ne, %4, %5 : vector<32x256xi32>
    %c0_i32_1 = arith.constant 0 : i32
    %7 = vector.broadcast %c0_i32_1 : i32 to vector<32x256xi32>
    %8 = arith.cmpi slt, %4, %7 : vector<32x256xi32>
    %c0_i32_2 = arith.constant 0 : i32
    %9 = arith.cmpi slt, %2, %c0_i32_2 : i32
    %10 = vector.broadcast %9 : i1 to vector<32x256xi1>
    %11 = vector.broadcast %10 : vector<32x256xi1> to vector<32x256xi1>
    %12 = arith.xori %8, %11 : vector<32x256xi1>
    %13 = arith.andi %12, %6 : vector<32x256xi1>
    %14 = vector.broadcast %2 : i32 to vector<32x256xi32>
    %15 = arith.addi %4, %14 : vector<32x256xi32>
    %16 = arith.select %13, %15, %4 : vector<32x256xi1>, vector<32x256xi32>
    %c0_i32_3 = arith.constant 0 : i32
    %17 = vector.broadcast %c0_i32_3 : i32 to vector<32x256xi32>
    %18 = arith.cmpi ne, %16, %17 : vector<32x256xi32>
    %c15_i32 = arith.constant 15 : i32
    %19 = vector.broadcast %c15_i32 : i32 to vector<32x256xi32>
    %20 = arith.cmpi ne, %16, %19 : vector<32x256xi32>
    %c0 = arith.constant 0 : index
    %c0_4 = arith.constant 0 : index
    %21 = vector.load %arg0[%c0, %c0_4] : memref<32x64xf32, #tpu.memory_space<vmem>>, vector<32x64xf32>
    %22 = arith.truncf %21 : vector<32x64xf32> to vector<32x64xbf16>
    %c0_5 = arith.constant 0 : index
    %c0_6 = arith.constant 0 : index
    %23 = vector.load %arg1[%c0_5, %c0_6] : memref<64x256xbf16, #tpu.memory_space<vmem>>, vector<64x256xbf16>
    %cst = arith.constant dense<0.000000e+00> : vector<32x256xf32>
    %24 = tpu.matmul %22, %23, %cst {dimension_numbers = #tpu.dot_dimension_numbers<[1], [0], [0], [1], [0, 0, 1, 1], [], []>} : vector<32x64xbf16>, vector<64x256xbf16>, vector<32x256xf32> -> vector<32x256xf32>
    %c0_7 = arith.constant 0 : index
    %c0_8 = arith.constant 0 : index
    %25 = vector.load %arg2[%c0_7, %c0_8] : memref<1x256xf32, #tpu.memory_space<vmem>>, vector<1x256xf32>
    %26 = vector.broadcast %25 : vector<1x256xf32> to vector<32x256xf32>
    %27 = arith.addf %24, %26 : vector<32x256xf32>
    %c1_i32_9 = arith.constant 1 : i32
    %28 = tpu.dynamic_rotate %27 by %c1_i32_9 dim 0 : vector<32x256xf32>, i32 -> vector<32x256xf32>
    %cst_10 = arith.constant 0.000000e+00 : f32
    %29 = vector.broadcast %cst_10 : f32 to vector<32x256xf32>
    %30 = arith.select %18, %28, %29 : vector<32x256xi1>, vector<32x256xf32>
    %c31_i32 = arith.constant 31 : i32
    %31 = tpu.dynamic_rotate %27 by %c31_i32 dim 0 : vector<32x256xf32>, i32 -> vector<32x256xf32>
    %cst_11 = arith.constant 0.000000e+00 : f32
    %32 = vector.broadcast %cst_11 : f32 to vector<32x256xf32>
    %33 = arith.select %20, %31, %32 : vector<32x256xi1>, vector<32x256xf32>
    %34 = tpu.concatenate %30, %27, %33 in 1 : vector<32x256xf32>, vector<32x256xf32>, vector<32x256xf32> -> vector<32x768xf32>
    %35 = arith.truncf %34 : vector<32x768xf32> to vector<32x768xbf16>
    %c0_12 = arith.constant 0 : index
    %c0_13 = arith.constant 0 : index
    %36 = vector.load %arg3[%c0_12, %c0_13] : memref<768x256xbf16, #tpu.memory_space<vmem>>, vector<768x256xbf16>
    %cst_14 = arith.constant dense<0.000000e+00> : vector<32x256xf32>
    %37 = tpu.matmul %35, %36, %cst_14 {dimension_numbers = #tpu.dot_dimension_numbers<[1], [0], [0], [1], [0, 0, 1, 1], [], []>} : vector<32x768xbf16>, vector<768x256xbf16>, vector<32x256xf32> -> vector<32x256xf32>
    %c0_15 = arith.constant 0 : index
    %c0_16 = arith.constant 0 : index
    %38 = vector.load %arg4[%c0_15, %c0_16] : memref<1x256xf32, #tpu.memory_space<vmem>>, vector<1x256xf32>
    %39 = vector.broadcast %38 : vector<1x256xf32> to vector<32x256xf32>
    %40 = arith.addf %37, %39 : vector<32x256xf32>
    %c1_i32_17 = arith.constant 1 : i32
    %41 = tpu.dynamic_rotate %40 by %c1_i32_17 dim 0 : vector<32x256xf32>, i32 -> vector<32x256xf32>
    %cst_18 = arith.constant 0.000000e+00 : f32
    %42 = vector.broadcast %cst_18 : f32 to vector<32x256xf32>
    %43 = arith.select %18, %41, %42 : vector<32x256xi1>, vector<32x256xf32>
    %c31_i32_19 = arith.constant 31 : i32
    %44 = tpu.dynamic_rotate %40 by %c31_i32_19 dim 0 : vector<32x256xf32>, i32 -> vector<32x256xf32>
    %cst_20 = arith.constant 0.000000e+00 : f32
    %45 = vector.broadcast %cst_20 : f32 to vector<32x256xf32>
    %46 = arith.select %20, %44, %45 : vector<32x256xi1>, vector<32x256xf32>
    %47 = tpu.concatenate %43, %40, %46 in 1 : vector<32x256xf32>, vector<32x256xf32>, vector<32x256xf32> -> vector<32x768xf32>
    %48 = arith.truncf %47 : vector<32x768xf32> to vector<32x768xbf16>
    %c0_21 = arith.constant 0 : index
    %c0_22 = arith.constant 0 : index
    %49 = vector.load %arg5[%c0_21, %c0_22] : memref<768x256xbf16, #tpu.memory_space<vmem>>, vector<768x256xbf16>
    %cst_23 = arith.constant dense<0.000000e+00> : vector<32x256xf32>
    %50 = tpu.matmul %48, %49, %cst_23 {dimension_numbers = #tpu.dot_dimension_numbers<[1], [0], [0], [1], [0, 0, 1, 1], [], []>} : vector<32x768xbf16>, vector<768x256xbf16>, vector<32x256xf32> -> vector<32x256xf32>
    %c0_24 = arith.constant 0 : index
    %c0_25 = arith.constant 0 : index
    %51 = vector.load %arg6[%c0_24, %c0_25] : memref<1x256xf32, #tpu.memory_space<vmem>>, vector<1x256xf32>
    %52 = vector.broadcast %51 : vector<1x256xf32> to vector<32x256xf32>
    %53 = arith.addf %50, %52 : vector<32x256xf32>
    %54 = arith.subf %53, %27 : vector<32x256xf32>
    %c1_i32_26 = arith.constant 1 : i32
    %55 = tpu.dynamic_rotate %54 by %c1_i32_26 dim 0 : vector<32x256xf32>, i32 -> vector<32x256xf32>
    %cst_27 = arith.constant 0.000000e+00 : f32
    %56 = vector.broadcast %cst_27 : f32 to vector<32x256xf32>
    %57 = arith.select %18, %55, %56 : vector<32x256xi1>, vector<32x256xf32>
    %c31_i32_28 = arith.constant 31 : i32
    %58 = tpu.dynamic_rotate %54 by %c31_i32_28 dim 0 : vector<32x256xf32>, i32 -> vector<32x256xf32>
    %cst_29 = arith.constant 0.000000e+00 : f32
    %59 = vector.broadcast %cst_29 : f32 to vector<32x256xf32>
    %60 = arith.select %20, %58, %59 : vector<32x256xi1>, vector<32x256xf32>
    %61 = tpu.concatenate %57, %54, %60 in 1 : vector<32x256xf32>, vector<32x256xf32>, vector<32x256xf32> -> vector<32x768xf32>
    %62 = arith.truncf %61 : vector<32x768xf32> to vector<32x768xbf16>
    %c0_30 = arith.constant 0 : index
    %c0_31 = arith.constant 0 : index
    %63 = vector.load %arg7[%c0_30, %c0_31] : memref<768x256xbf16, #tpu.memory_space<vmem>>, vector<768x256xbf16>
    %cst_32 = arith.constant dense<0.000000e+00> : vector<32x256xf32>
    %64 = tpu.matmul %62, %63, %cst_32 {dimension_numbers = #tpu.dot_dimension_numbers<[1], [0], [0], [1], [0, 0, 1, 1], [], []>} : vector<32x768xbf16>, vector<768x256xbf16>, vector<32x256xf32> -> vector<32x256xf32>
    %c0_33 = arith.constant 0 : index
    %c0_34 = arith.constant 0 : index
    %65 = vector.load %arg8[%c0_33, %c0_34] : memref<1x256xf32, #tpu.memory_space<vmem>>, vector<1x256xf32>
    %66 = vector.broadcast %65 : vector<1x256xf32> to vector<32x256xf32>
    %67 = arith.addf %64, %66 : vector<32x256xf32>
    %68 = arith.addf %67, %40 : vector<32x256xf32>
    %c0_35 = arith.constant 0 : index
    %c0_36 = arith.constant 0 : index
    %69 = vector.load %arg9[%c0_35, %c0_36] : memref<32x256xf32, #tpu.memory_space<vmem>>, vector<32x256xf32>
    tpu.vector_store %arg9[%c0_35, %c0_36], %68 {strides = array<i32>} : memref<32x256xf32, #tpu.memory_space<vmem>>, vector<32x256xf32>,
    return
  }
}

</mosaic_0001>

<bundles_post_ra>
// kernel: tpu_custom_call.1
= control target key start
LH: loop header
LB: loop body
LE: loop exit
PB: predicated region body
PF: predicated region fallthrough
CT: control target
= control target key end

     0   :  { %14 = vsyncpa [#allocation3], 0  ;;  %s4173_s0 = inlined_call_operand.hbm [shape: f32[32,64], index: 0, kind: input, shape index: {}]   ;;  %s4174_s1 = inlined_call_operand.hbm [shape: bf16[64,256], index: 1, kind: input, shape index: {}]   ;;  %s4175_s2 = inlined_call_operand.vmem [shape: f32[1,256], index: 2, kind: input, shape index: {}]   ;;  %s4176_s3 = inlined_call_operand.hbm [shape: bf16[768,256], index: 3, kind: input, shape index: {}]   ;;  %s4177_s4 = inlined_call_operand.vmem [shape: f32[1,256], index: 4, kind: input, shape index: {}]   ;;  %s4178_s5 = inlined_call_operand.hbm [shape: bf16[768,256], index: 5, kind: input, shape index: {}]   ;;  %s4179_s6 = inlined_call_operand.vmem [shape: f32[1,256], index: 6, kind: input, shape index: {}]   ;;  %s4180_s7 = inlined_call_operand.hbm [shape: bf16[768,256], index: 7, kind: input, shape index: {}]   ;;  %s4181_s8 = inlined_call_operand.vmem [shape: f32[1,256], index: 8, kind: input, shape index: {}]   ;;  %s4182_s9 = inlined_call_operand.hbm [shape: f32[32,256], index: 9, kind: output, shape index: {}]  }
   0x1   :  { %15 = vsyncpa [#allocation6], 0 }
   0x2   :  { %16 = vsyncpa [#allocation9], 0 }
   0x3   :  { %17 = vsyncpa [#allocation4], 0  ;;  %s3709_s30 = smov [#allocation5]   ;;  %s3710_s11 = smov [#allocation8]  }
   0x4   :  { %s35_s10 = sshll.u32 %s3709_s30, 4  ;;  %s63_s12 = sshll.u32 %s3710_s11, 4  ;;  %s36_s10 = int_to_ptr.vmem [resolvable:$true] %s35_s10  ;;  %s64_s12 = int_to_ptr.vmem [resolvable:$true] %s63_s12 }
   0x5   :  { %s3589_s13 = scalar_lea.vmem %s36_s10, 1024  ;;  %p3594_p1 = scmp.lt.s32.totalorder %s36_s10, %s36_s10 }
   0x6   :  { %p3590_p0 = scmp.ne.s32.totalorder %s36_s10, %s3589_s13  ;;  %p3595_p2 = scmp.lt.s32.totalorder %s3589_s13, %s3589_s13 }
   0x8   :  { %p3596_p3 = por %p3595_p2, %p3594_p1 }
   0xa   :  { %p3597_p4 = pnand %p3596_p3, %p3590_p0 }
   0xc   :  { %3600 = shalt.err (!%p3597_p4)
}
   0xd   :  { %s3711_s14 = smov 128   ;;  %s3712_s15 = smov 8  }
   0xe   :  { %41 = dma.hbm_to_vmem [thread:$0]  %s4174_s1, 1024, %s36_s10, [#allocation6], %s3711_s14, %s3711_s14, %s3712_s15  }
   0xf   :  { %s3609_s18 = scalar_lea.vmem %s64_s12, 12288  ;;  %p3614_p6 = scmp.lt.s32.totalorder %s64_s12, %s64_s12 }
  0x10   :  { %p3610_p5 = scmp.ne.s32.totalorder %s64_s12, %s3609_s18  ;;  %p3615_p7 = scmp.lt.s32.totalorder %s3609_s18, %s3609_s18 }
  0x12   :  { %p3616_p8 = por %p3615_p7, %p3614_p6 }
  0x14   :  { %p3617_p9 = pnand %p3616_p8, %p3610_p5 }
  0x16   :  { %3620 = shalt.err (!%p3617_p9)
}
  0x17   :  { %69 = dma.hbm_to_vmem [thread:$0]  %s4178_s5, 12288, %s64_s12, [#allocation9], %s3711_s14, %s3711_s14, %s3712_s15  }
  0x18   :  { %s3713_s21 = smov [#allocation2]   ;;  %s3714_s23 = smov [#allocation7]  }
  0x19   :  { %s23_s22 = sshll.u32 %s3713_s21, 4  ;;  %s49_s24 = sshll.u32 %s3714_s23, 4  ;;  %s24_s22 = int_to_ptr.vmem [resolvable:$true] %s23_s22  ;;  %s50_s24 = int_to_ptr.vmem [resolvable:$true] %s49_s24 }
  0x1a   :  { %s3629_s1 = scalar_lea.vmem %s24_s22, 512  ;;  %p3634_p11 = scmp.lt.s32.totalorder %s24_s22, %s24_s22 }
  0x1b   :  { %p3630_p10 = scmp.ne.s32.totalorder %s24_s22, %s3629_s1  ;;  %p3635_p12 = scmp.lt.s32.totalorder %s3629_s1, %s3629_s1 }
  0x1d   :  { %p3636_p13 = por %p3635_p12, %p3634_p11 }
  0x1f   :  { %p3637_p0 = pnand %p3636_p13, %p3630_p10 }
  0x21   :  { %3640 = shalt.err (!%p3637_p0)
}
  0x22   :  { %29 = dma.hbm_to_vmem [thread:$0]  %s4173_s0, 512, %s24_s22, [#allocation3], %s3711_s14, %s3711_s14, %s3712_s15  }
  0x23   :  { %s3649_s5 = scalar_lea.vmem %s50_s24, 12288  ;;  %p3654_p2 = scmp.lt.s32.totalorder %s50_s24, %s50_s24 }
  0x24   :  { %p3650_p1 = scmp.ne.s32.totalorder %s50_s24, %s3649_s5  ;;  %p3655_p3 = scmp.lt.s32.totalorder %s3649_s5, %s3649_s5 }
  0x26   :  { %p3656_p4 = por %p3655_p3, %p3654_p2 }
  0x28   :  { %p3657_p5 = pnand %p3656_p4, %p3650_p1 }
  0x2a   :  { %3660 = shalt.err (!%p3657_p5)
}
  0x2b   :  { %55 = dma.hbm_to_vmem [thread:$0]  %s4176_s3, 12288, %s50_s24, [#allocation6], %s3711_s14, %s3711_s14, %s3712_s15  }
  0x2c   :  { %s3715_s29 = smov [#allocation10]  }
  0x2d   :  { %s77_s30 = sshll.u32 %s3715_s29, 4  ;;  %s78_s30 = int_to_ptr.vmem [resolvable:$true] %s77_s30 }
  0x2e   :  { %s3669_s10 = scalar_lea.vmem %s78_s30, 12288  ;;  %p3674_p7 = scmp.lt.s32.totalorder %s78_s30, %s78_s30 }
  0x2f   :  { %p3670_p6 = scmp.ne.s32.totalorder %s78_s30, %s3669_s10  ;;  %p3675_p8 = scmp.lt.s32.totalorder %s3669_s10, %s3669_s10 }
  0x31   :  { %p3676_p9 = por %p3675_p8, %p3674_p7 }
  0x33   :  { %p3677_p10 = pnand %p3676_p9, %p3670_p6 }
  0x35   :  { %3680 = shalt.err (!%p3677_p10)
}
  0x36   :  { %83 = dma.hbm_to_vmem [thread:$0]  %s4180_s7, 12288, %s78_s30, [#allocation9], %s3711_s14, %s3711_s14, %s3712_s15  }
  0x37   :  { %3701 = dma.done.wait [#allocation3], 512  }
  0x38   :  { %3702 = vsyncadd [#allocation3], 4294966784 }
  0x39   :  { %3703 = dma.done.wait [#allocation6], 13312  }
  0x3a   :  { %3704 = vsyncadd [#allocation6], 4294953984 }
  0x3b   :  { %3705 = dma.done.wait [#allocation9], 24576  }
  0x3c   :  { %3706 = vsyncadd [#allocation9], 4294942720  ;;  %v3716_v0 = vmov 0   ;;  %v3137_v1 = vld [vmem:[#allocation5 + $0x34] ss:$8 sps:$4 sm:$0xff]   ;;  %v163_v9 = vld [vmem:[#allocation2] sm:$0xff] }
  0x3d   :  { %268 = vmatprep.mubr.bf16.mxu0 %v3716_v0  ;;  %v3139_v2 = vld [vmem:[#allocation5 + $0x30] ss:$8 sps:$4 sm:$0xff]   ;;  %244 = vmatprep.subr.bf16.mxu0 %v3137_v1  ;;  %v3140_v3 = vld [vmem:[#allocation5 + $0x24] ss:$8 sps:$4 sm:$0xff]   ;;  %v3142_v4 = vld [vmem:[#allocation5 + $0x20] ss:$8 sps:$4 sm:$0xff]  }
  0x3e   :  { %245 = vmatpush1.bf16.msra.mxu0 %v3139_v2  ;;  %v3143_v5 = vld [vmem:[#allocation5 + $0x14] ss:$8 sps:$4 sm:$0xff]   ;;  %v3145_v6 = vld [vmem:[#allocation5 + $0x10] ss:$8 sps:$4 sm:$0xff]   ;;  %v3146_v7 = vld [vmem:[#allocation5 + $0x4] ss:$8 sps:$4 sm:$0xff]  }
  0x3f   :  { %246 = vmatprep.subr.bf16.mxu0 %v3140_v3  ;;  %v3148_v8 = vld [vmem:[#allocation5] ss:$8 sps:$4 sm:$0xff]   ;;  %v3158_v11 = vld [vmem:[#allocation7 + $0x74] ss:$8 sps:$4 sm:$0xff]   ;;  %v3160_v12 = vld [vmem:[#allocation7 + $0x70] ss:$8 sps:$4 sm:$0xff]  }
  0x40   :  { %v164_v10 = vld [vmem:[#allocation2 + $0x8] sm:$0xff]  ;;  %v3151_v13 = vld [vmem:[#allocation7 + $0x174] ss:$8 sps:$4 sm:$0xff]   ;;  %939 = vmatprep.subr.bf16.mxu1 %v3158_v11  ;;  %vm229_vm0 = vcmask 523264   ;;  %v3149_v17 = vld [vmem:[#allocation7 + $0x170] ss:$8 sps:$4 sm:$0xff]  }
  0x41   :  { %v167_v14 = vpack.c.bf16 %v164_v10, %v163_v9  ;;  %940 = vmatpush1.bf16.msra.mxu1 %v3160_v12  ;;  %v3164_v15 = vld [vmem:[#allocation7 + $0x64] ss:$8 sps:$4 sm:$0xff]   ;;  %v3166_v16 = vld [vmem:[#allocation7 + $0x60] ss:$8 sps:$4 sm:$0xff]   ;;  %v3170_v19 = vld [vmem:[#allocation7 + $0x54] ss:$8 sps:$4 sm:$0xff]  }
  0x42   :  { %247 = vmatpush1.bf16.msra.mxu0 %v3142_v4  ;;  %v3154_v18 = vld [vmem:[#allocation7 + $0x164] ss:$8 sps:$4 sm:$0xff]   ;;  %941 = vmatprep.subr.bf16.mxu1 %v3164_v15  ;;  %v165_v20 = vld [vmem:[#allocation2 + $0x10] sm:$0xff]  ;;  %v166_v21 = vld [vmem:[#allocation2 + $0x18] sm:$0xff]  ;;  %vm3717_vm4 = vmmov 1  }
  0x43   :  { %248 = vmatprep.subr.bf16.mxu0 %v3143_v5  ;;  %v3172_v22 = vld [vmem:[#allocation7 + $0x50] ss:$8 sps:$4 sm:$0xff]   ;;  %v3152_v23 = vld [vmem:[#allocation7 + $0x160] ss:$8 sps:$4 sm:$0xff]   ;;  %v3176_v24 = vld [vmem:[#allocation7 + $0x44] ss:$8 sps:$4 sm:$0xff]   ;;  %v168_v26 = vpack.c.bf16 %v166_v21, %v165_v20 }
  0x44   :  { %v3157_v25 = vld [vmem:[#allocation7 + $0x154] ss:$8 sps:$4 sm:$0xff]   ;;  %v3178_v27 = vld [vmem:[#allocation7 + $0x40] ss:$8 sps:$4 sm:$0xff]   ;;  %v3155_v28 = vld [vmem:[#allocation7 + $0x150] ss:$8 sps:$4 sm:$0xff]  }
  0x45   :  { %942 = vmatpush1.bf16.msra.mxu1 %v3166_v16  ;;  %v3182_v29 = vld [vmem:[#allocation7 + $0x34] ss:$8 sps:$4 sm:$0xff]   ;;  %v3163_v30 = vld [vmem:[#allocation7 + $0x144] ss:$8 sps:$4 sm:$0xff]   ;;  %v3184_v31 = vld [vmem:[#allocation7 + $0x30] ss:$8 sps:$4 sm:$0xff]   ;;  %v102_v16 = vlaneseq }
  0x46   :  { %249 = vmatpush1.bf16.msra.mxu0 %v3145_v6  ;;  %943 = vmatprep.subr.bf16.mxu1 %v3170_v19  ;;  %v3161_v32 = vld [vmem:[#allocation7 + $0x140] ss:$8 sps:$4 sm:$0xff]   ;;  %v3188_v33 = vld [vmem:[#allocation7 + $0x24] ss:$8 sps:$4 sm:$0xff]   ;;  %v3169_v34 = vld [vmem:[#allocation7 + $0x134] ss:$8 sps:$4 sm:$0xff]  }
  0x47   :  { %250 = vmatprep.subr.bf16.mxu0 %v3146_v7  ;;  %v3190_v35 = vld [vmem:[#allocation7 + $0x20] ss:$8 sps:$4 sm:$0xff]   ;;  %v3167_v36 = vld [vmem:[#allocation7 + $0x130] ss:$8 sps:$4 sm:$0xff]   ;;  %v3194_v37 = vld [vmem:[#allocation7 + $0x14] ss:$8 sps:$4 sm:$0xff]  }
  0x48   :  { %v3175_v38 = vld [vmem:[#allocation7 + $0x124] ss:$8 sps:$4 sm:$0xff]   ;;  %v3196_v39 = vld [vmem:[#allocation7 + $0x10] ss:$8 sps:$4 sm:$0xff]   ;;  %v3173_v40 = vld [vmem:[#allocation7 + $0x120] ss:$8 sps:$4 sm:$0xff]  }
  0x49   :  { %944 = vmatpush1.bf16.msra.mxu1 %v3172_v22  ;;  %v3200_v41 = vld [vmem:[#allocation7 + $0x4] ss:$8 sps:$4 sm:$0xff]   ;;  %v3181_v42 = vld [vmem:[#allocation7 + $0x114] ss:$8 sps:$4 sm:$0xff]   ;;  %v3179_v43 = vld [vmem:[#allocation7 + $0x110] ss:$8 sps:$4 sm:$0xff]  }
  0x4a   :  { %251 = vmatpush1.bf16.msra.mxu0 %v3148_v8  ;;  %945 = vmatprep.subr.bf16.mxu1 %v3176_v24  ;;  %v3187_v44 = vld [vmem:[#allocation7 + $0x104] ss:$8 sps:$4 sm:$0xff]   ;;  %v3202_v45 = vld [vmem:[#allocation7] ss:$8 sps:$4 sm:$0xff]   ;;  %v3206_v46 = vld [vmem:[#allocation7 + $0xf4] ss:$8 sps:$4 sm:$0xff]  }
  0x4b   :  { %992 = vmatprep.subr.bf16.mxu0 %v3151_v13  ;;  %v3208_v47 = vld [vmem:[#allocation7 + $0xf0] ss:$8 sps:$4 sm:$0xff]   ;;  %v3185_v48 = vld [vmem:[#allocation7 + $0x100] ss:$8 sps:$4 sm:$0xff]   ;;  %v3212_v49 = vld [vmem:[#allocation7 + $0xe4] ss:$8 sps:$4 sm:$0xff]  }
  0x4c   :  { %v3193_v50 = vld [vmem:[#allocation7 + $0x1f4] ss:$8 sps:$4 sm:$0xff]   ;;  %v3214_v51 = vld [vmem:[#allocation7 + $0xe0] ss:$8 sps:$4 sm:$0xff]   ;;  %v3191_v52 = vld [vmem:[#allocation7 + $0x1f0] ss:$8 sps:$4 sm:$0xff]  }
  0x4d   :  { %2763 = vmatmul.mubr.msk.bf16.vlgmr.msra.gmra.mxu0 %vm229_vm0, %v167_v14  ;;  %946 = vmatpush1.bf16.msra.mxu1 %v3178_v27  ;;  %v3218_v53 = vld [vmem:[#allocation7 + $0xd4] ss:$8 sps:$4 sm:$0xff]   ;;  %v3199_v54 = vld [vmem:[#allocation7 + $0x1e4] ss:$8 sps:$4 sm:$0xff]   ;;  %v3220_v55 = vld [vmem:[#allocation7 + $0xd0] ss:$8 sps:$4 sm:$0xff]  }
  0x4e   :  { %278 = vmatprep.mubr.bf16.mxu0 %v3716_v0  ;;  %993 = vmatpush1.bf16.msra.mxu0 %v3149_v17  ;;  %v3197_v56 = vld [vmem:[#allocation7 + $0x1e0] ss:$8 sps:$4 sm:$0xff]   ;;  %v3205_v57 = vld [vmem:[#allocation7 + $0x1d4] ss:$8 sps:$4 sm:$0xff]   ;;  %v3203_v58 = vld [vmem:[#allocation7 + $0x1d0] ss:$8 sps:$4 sm:$0xff]  }
  0x4f   :  { %994 = vmatprep.subr.bf16.mxu0 %v3154_v18  ;;  %947 = vmatprep.subr.bf16.mxu1 %v3182_v29  ;;  %v3211_v59 = vld [vmem:[#allocation7 + $0x1c4] ss:$8 sps:$4 sm:$0xff]   ;;  %v3209_v60 = vld [vmem:[#allocation7 + $0x1c0] ss:$8 sps:$4 sm:$0xff]   ;;  %v3217_v61 = vld [vmem:[#allocation7 + $0x1b4] ss:$8 sps:$4 sm:$0xff]  }
  0x50   :  { %v3215_v62 = vld [vmem:[#allocation7 + $0x1b0] ss:$8 sps:$4 sm:$0xff]   ;;  %v3223_v63 = vld [vmem:[#allocation7 + $0x1a4] ss:$8 sps:$4 sm:$0xff]   ;;  %v3221_v0 = vld [vmem:[#allocation7 + $0x1a0] ss:$8 sps:$4 sm:$0xff]  }
  0x51   :  { %948 = vmatpush1.bf16.msra.mxu1 %v3184_v31  ;;  %v3224_v1 = vld [vmem:[#allocation7 + $0xc4] ss:$8 sps:$4 sm:$0xff]   ;;  %v3226_v2 = vld [vmem:[#allocation7 + $0xc0] ss:$8 sps:$4 sm:$0xff]   ;;  %v3229_v3 = vld [vmem:[#allocation7 + $0x194] ss:$8 sps:$4 sm:$0xff]  }
  0x52   :  { %995 = vmatpush1.bf16.msra.mxu0 %v3152_v23  ;;  %949 = vmatprep.subr.bf16.mxu1 %v3188_v33  ;;  %v3227_v4 = vld [vmem:[#allocation7 + $0x190] ss:$8 sps:$4 sm:$0xff]   ;;  %v3230_v5 = vld [vmem:[#allocation7 + $0xb4] ss:$8 sps:$4 sm:$0xff]   ;;  %v3235_v7 = vld [vmem:[#allocation7 + $0x184] ss:$8 sps:$4 sm:$0xff]  }
  0x53   :  { %996 = vmatprep.subr.bf16.mxu0 %v3157_v25  ;;  %v3232_v6 = vld [vmem:[#allocation7 + $0xb0] ss:$8 sps:$4 sm:$0xff]   ;;  %v3233_v8 = vld [vmem:[#allocation7 + $0x180] ss:$8 sps:$4 sm:$0xff]   ;;  %v3236_v9 = vld [vmem:[#allocation7 + $0xa4] ss:$8 sps:$4 sm:$0xff]  }
  0x54   :  { %v3238_v10 = vld [vmem:[#allocation7 + $0xa0] ss:$8 sps:$4 sm:$0xff]   ;;  %v3239_v11 = vld [vmem:[#allocation7 + $0x94] ss:$8 sps:$4 sm:$0xff]   ;;  %v3241_v12 = vld [vmem:[#allocation7 + $0x90] ss:$8 sps:$4 sm:$0xff]  }
  0x55   :  { %2764 = vmatmul.mubr.msk.bf16.gmra.mxu0 %vm229_vm0, %v168_v26  ;;  %950 = vmatpush1.bf16.msra.mxu1 %v3190_v35  ;;  %v3242_v13 = vld [vmem:[#allocation7 + $0x84] ss:$8 sps:$4 sm:$0xff]   ;;  %v3244_v14 = vld [vmem:[#allocation7 + $0x80] ss:$8 sps:$4 sm:$0xff]   ;;  %v3247_v15 = vld [vmem:[#allocation7 + $0x274] ss:$8 sps:$4 sm:$0xff]  }
  0x56   :  { %997 = vmatpush1.bf16.msra.mxu0 %v3155_v28  ;;  %951 = vmatprep.subr.bf16.mxu1 %v3194_v37  ;;  %v3803_v17 = vshrl.u32 %v102_v16, 7  ;;  %v177_v21 = vld [vmem:[%s4175_s2] sm:$0x3] }
  0x57   :  { %998 = vmatprep.subr.bf16.mxu0 %v3163_v30 }
  0x58   :  { %v3806_v18 = vsub.s32 1, %v3803_v17  ;;  %v3809_v19 = vsub.s32 0, %v3803_v17  ;;  %v105_v35 = vadd.s32 16, %v3803_v17  ;;  %vm297_vm1 = vcmp.lt.s32.totalorder %v3803_v17, 1 }
  0x59   :  { %952 = vmatpush1.bf16.msra.mxu1 %v3196_v39  ;;  %vm322_vm7 = vcmp.lt.s32.totalorder %v3803_v17, 7 }
  0x5a   :  { %999 = vmatpush1.bf16.msra.mxu0 %v3161_v32  ;;  %953 = vmatprep.subr.bf16.mxu1 %v3200_v41  ;;  %v186_v23 = vrot.slane %v177_v21, %v3806_v18  ;;  %v182_v24 = vrot.slane %v177_v21, %v3809_v19  ;;  %v125_v41 = vand.u32 15, %v105_v35  ;;  %v3256_v21 = vld [vmem:[#allocation7 + $0x244] ss:$8 sps:$4 sm:$0xff]   ;;  %v3266_v35 = vld [vmem:[#allocation7 + $0x200] ss:$8 sps:$4 sm:$0xff]  }
  0x5b   :  { %1000 = vmatprep.subr.bf16.mxu0 %v3169_v34 }
  0x5c   :  { %vm157_vm3 = vcmp.ne.s32.totalorder %v125_v41, 0  ;;  %v3272_v41 = vld [vmem:[#allocation7 + $0x2e0] ss:$8 sps:$4 sm:$0xff]  }
  0x5d   :  { %954 = vmatpush1.bf16.msra.mxu1 %v3202_v45  ;;  %vm3875_vm6 = vmpackc.low %vm3717_vm4, %vm157_vm3 }
  0x5e   :  { %1001 = vmatpush1.bf16.msra.mxu0 %v3167_v36  ;;  %955 = vmatprep.subr.bf16.mxu1 %v3206_v46  ;;  %v111_v36 = vand.u32 15, %v3803_v17 }
  0x5f   :  { %1002 = vmatprep.subr.bf16.mxu0 %v3175_v38 }
  0x60   :  { %vm3838_vm2 = vcmp.ne.s32.totalorder %v111_v36, 0  ;;  %v3271_v36 = vld [vmem:[#allocation7 + $0x2f4] ss:$8 sps:$4 sm:$0xff]  }
  0x61   :  { %956 = vmatpush2.bf16.msra.mxu1 %v3208_v47  ;;  %vm3864_vm5 = vmpackc.low %vm3717_vm4, %vm3838_vm2 }
  0x62   :  { %1003 = vmatpush1.bf16.msra.mxu0 %v3173_v40  ;;  %957 = vmatprep.subr.bf16.mxu1 %v3212_v49 }
  0x63   :  { %1004 = vmatprep.subr.bf16.mxu0 %v3181_v42 }
  0x65   :  { %958 = vmatpush2.bf16.msra.mxu1 %v3214_v51 }
  0x66   :  { %1005 = vmatpush1.bf16.msra.mxu0 %v3179_v43  ;;  %959 = vmatprep.subr.bf16.mxu1 %v3218_v53 }
  0x67   :  { %1006 = vmatprep.subr.bf16.mxu0 %v3187_v44  ;;  %v3275_v44 = vld [vmem:[#allocation7 + $0x2d0] ss:$8 sps:$4 sm:$0xff]  }
  0x69   :  { %960 = vmatpush2.bf16.msra.mxu1 %v3220_v55  ;;  %v104_v55 = vadd.s32 8, %v3803_v17 }
  0x6a   :  { %1007 = vmatpush1.bf16.msra.mxu0 %v3185_v48  ;;  %961 = vmatprep.subr.bf16.mxu1 %v3224_v1  ;;  %v3556_v1 = vld [vmem:[#allocation10 + $0x204] ss:$8 sps:$4 sm:$0xff]  }
  0x6b   :  { %1008 = vmatprep.subr.bf16.mxu0 %v3193_v50 }
  0x6d   :  { %962 = vmatpush2.bf16.msra.mxu1 %v3226_v2  ;;  %v3250_v2 = vld [vmem:[#allocation7 + $0x264] ss:$8 sps:$4 sm:$0xff]  }
  0x6e   :  { %1009 = vmatpush2.bf16.msra.mxu0 %v3191_v52  ;;  %963 = vmatprep.subr.bf16.mxu1 %v3230_v5 }
  0x6f   :  { %1010 = vmatprep.subr.bf16.mxu0 %v3199_v54 }
  0x71   :  { %964 = vmatpush2.bf16.msra.mxu1 %v3232_v6 }
  0x72   :  { %1011 = vmatpush2.bf16.msra.mxu0 %v3197_v56  ;;  %965 = vmatprep.subr.bf16.mxu1 %v3236_v9  ;;  %v3253_v9 = vld [vmem:[#allocation7 + $0x254] ss:$8 sps:$4 sm:$0xff]  }
  0x73   :  { %1012 = vmatprep.subr.bf16.mxu0 %v3205_v57 }
  0x75   :  { %966 = vmatpush2.bf16.msra.mxu1 %v3238_v10 }
  0x76   :  { %1013 = vmatpush2.bf16.msra.mxu0 %v3203_v58  ;;  %967 = vmatprep.subr.bf16.mxu1 %v3239_v11 }
  0x77   :  { %1014 = vmatprep.subr.bf16.mxu0 %v3211_v59 }
  0x79   :  { %968 = vmatpush2.bf16.msra.mxu1 %v3241_v12 }
  0x7a   :  { %1015 = vmatpush2.bf16.msra.mxu0 %v3209_v60  ;;  %969 = vmatprep.subr.bf16.mxu1 %v3242_v13  ;;  %v3251_v13 = vld [vmem:[#allocation7 + $0x250] ss:$8 sps:$4 sm:$0xff]  }
  0x7b   :  { %1016 = vmatprep.subr.bf16.mxu0 %v3217_v61  ;;  %v3245_v61 = vld [vmem:[#allocation7 + $0x270] ss:$8 sps:$4 sm:$0xff]  }
  0x7d   :  { %970 = vmatpush2.bf16.msra.mxu1 %v3244_v14 }
  0x7e   :  { %1017 = vmatpush2.bf16.msra.mxu0 %v3215_v62  ;;  %1045 = vmatprep.subr.bf16.mxu1 %v3247_v15 }
  0x7f   :  { %1018 = vmatprep.subr.bf16.mxu0 %v3223_v63 }
  0x82   :  { %1019 = vmatpush2.bf16.msra.mxu0 %v3221_v0 }
  0x83   :  { %1020 = vmatprep.subr.bf16.mxu0 %v3229_v3 }
  0x86   :  { %1021 = vmatpush2.bf16.msra.mxu0 %v3227_v4  ;;  %v118_v4 = vand.u32 15, %v104_v55  ;;  %v3292_v55 = vld [vmem:[#allocation7 + $0x284] ss:$8 sps:$4 sm:$0xff]  }
  0x87   :  { %1022 = vmatprep.subr.bf16.mxu0 %v3235_v7  ;;  %v3248_v7 = vld [vmem:[#allocation7 + $0x260] ss:$8 sps:$4 sm:$0xff]  }
  0x88   :  { %vm160_vm8 = vcmp.ne.s32.totalorder %v118_v4, 15 }
  0x89   :  { %vm3903_vm9 = vmpackc.low %vm160_vm8, %vm3717_vm4 }
  0x8a   :  { %1023 = vmatpush2.bf16.msra.mxu0 %v3233_v8 }
 0x10d   :  { %v270_v20 = vpop.f32.mrf.mxu0 }
 0x10e   :  { %v3822_v30 = vadd.f32 %v270_v20, %v182_v24  ;;  %v2069_v20 = vld [vmem:[%s4181_s8] sm:$0x3]  ;;  %s3718_s8 = smov [#allocation11]  }
 0x10f   :  { %v272_v22 = vpop.f32.mrf.mxu0  ;;  %s2741_s15 = sshll.u32 %s3718_s8, 4  ;;  %s2742_s15 = int_to_ptr.vmem [resolvable:$true] %s2741_s15 }
 0x110   :  { %v3818_v28 = vadd.f32 %v272_v22, %v186_v23  ;;  %v289_v46 = vrot.slane %v3822_v30, 7  ;;  %s3681_s16 = scalar_lea.vmem %s2742_s15, 1024  ;;  %p3686_p12 = scmp.lt.s32.totalorder %s2742_s15, %s2742_s15 }
 0x111   :  { %v274_v25 = vpop.f32.mrf.mxu0  ;;  %p3682_p11 = scmp.ne.s32.totalorder %s2742_s15, %s3681_s16  ;;  %p3687_p13 = scmp.lt.s32.totalorder %s3681_s16, %s3681_s16 }
 0x112   :  { %v3816_v26 = vadd.f32 %v274_v25, %v182_v24  ;;  %v290_v51 = vrot.slane %v3818_v28, 7  ;;  %v315_v11 = vrot.slane %v3818_v28, 1  ;;  %v3257_v25 = vld [vmem:[#allocation7 + $0x230] ss:$8 sps:$4 sm:$0xff]  }
 0x113   :  { %v276_v27 = vpop.f32.mrf.mxu0  ;;  %p3688_p0 = por %p3687_p13, %p3686_p12 }
 0x114   :  { %v3820_v29 = vadd.f32 %v276_v27, %v186_v23  ;;  %v341_v33 = vpack.c.bf16 %v3816_v26, %v3822_v30  ;;  %v291_v47 = vrot.slane %v3816_v26, 7  ;;  %v3262_v27 = vld [vmem:[#allocation7 + $0x224] ss:$8 sps:$4 sm:$0xff]  }
 0x115   :  { %v280_v31 = vpop.f32.mrf.mxu0  ;;  %p3689_p1 = pnand %p3688_p0, %p3682_p11 }
 0x116   :  { %v342_v32 = vpack.c.bf16 %v3820_v29, %v3818_v28  ;;  %v292_v45 = vrot.slane %v3820_v29, 7  ;;  %v3845_v48 = vadd.f32 %v280_v31, %v182_v24  ;;  %v302_v62 = vsel %vm297_vm1, %v289_v46, %v291_v47  ;;  %v3260_v31 = vld [vmem:[#allocation7 + $0x220] ss:$8 sps:$4 sm:$0xff]  }
 0x117   :  { %v282_v34 = vpop.f32.mrf.mxu0  ;;  %v317_v8 = vrot.slane %v3820_v29, 1 }
 0x118   :  { %1024 = vmatprep.mubr.bf16.mxu0 %v342_v32  ;;  %v3830_v38 = vadd.f32 %v282_v34, %v186_v23  ;;  %v303_v56 = vsel %vm297_vm1, %v290_v51, %v292_v45  ;;  %v293_v6 = vrot.slane %v3845_v48, 7  ;;  %v3265_v32 = vld [vmem:[#allocation7 + $0x214] ss:$8 sps:$4 sm:$0xff]   ;;  %v3268_v34 = vld [vmem:[#allocation7 + $0x204] ss:$8 sps:$4 sm:$0xff]  }
 0x119   :  { %v284_v37 = vpop.f32.mrf.mxu0  ;;  %1025 = vmatmul.mubr.bf16.vlgmr.msra.gmra.mxu0 %v341_v33  ;;  %v328_v16 = vsel %vm322_vm7, %v315_v11, %v317_v8  ;;  %v3263_v33 = vld [vmem:[#allocation7 + $0x210] ss:$8 sps:$4 sm:$0xff]  }
 0x11a   :  { %v3832_v39 = vadd.f32 %v284_v37, %v182_v24  ;;  %v294_v49 = vrot.slane %v3830_v38, 7  ;;  %v319_v5 = vrot.slane %v3830_v38, 1  ;;  %v300_v14 = vsel %vm297_vm1, %v291_v47, %v293_v6  ;;  %v3259_v24 = vld [vmem:[#allocation7 + $0x234] ss:$8 sps:$4 sm:$0xff]   ;;  %v3269_v37 = vld [vmem:[#allocation7 + $0x2f0] ss:$8 sps:$4 sm:$0xff]  }
 0x11b   :  { %v286_v40 = vpop.f32.mrf.mxu0  ;;  %v3283_v47 = vld [vmem:[#allocation7 + $0x2b4] ss:$8 sps:$4 sm:$0xff]  }
 0x11c   :  { %v295_v42 = vrot.slane %v3832_v39, 7  ;;  %v3836_v43 = vadd.f32 %v286_v40, %v186_v23  ;;  %v347_v53 = vpack.c.bf16 %v3832_v39, %v3845_v48  ;;  %v301_v0 = vsel %vm297_vm1, %v292_v45, %v294_v49  ;;  %v3254_v23 = vld [vmem:[#allocation7 + $0x240] ss:$8 sps:$4 sm:$0xff]   ;;  %v3274_v40 = vld [vmem:[#allocation7 + $0x2e4] ss:$8 sps:$4 sm:$0xff]  }
 0x11d   :  { %v326_v12 = vsel %vm322_vm7, %v317_v8, %v319_v5  ;;  %v3280_v45 = vld [vmem:[#allocation7 + $0x2c4] ss:$8 sps:$4 sm:$0xff]  }
 0x11e   :  { %v348_v50 = vpack.c.bf16 %v3836_v43, %v3830_v38  ;;  %v296_v52 = vrot.slane %v3836_v43, 7  ;;  %v304_v54 = vsel %vm297_vm1, %v295_v42, %v289_v46  ;;  %v298_v10 = vsel %vm297_vm1, %v293_v6, %v295_v42  ;;  %v3277_v42 = vld [vmem:[#allocation7 + $0x2d4] ss:$8 sps:$4 sm:$0xff]   ;;  %v3278_v46 = vld [vmem:[#allocation7 + $0x2c0] ss:$8 sps:$4 sm:$0xff]  }
 0x11f   :  { %v2865_v63 = vpack.c.bf16 %v302_v62, %v304_v54  ;;  %v2871_v15 = vpack.c.bf16 %v298_v10, %v300_v14  ;;  %v2874_v22 = vpack.c.bf16 %v326_v12, %v328_v16  ;;  %v3287_v54 = vld [vmem:[#allocation7 + $0x290] ss:$8 sps:$4 sm:$0xff]   ;;  %v314_v62 = vrot.slane %v3822_v30, 1  ;;  %v3295_v12 = vld [vmem:[#allocation8 + $0x174] ss:$8 sps:$4 sm:$0xff]  }
 0x120   :  { %1034 = vmatprep.mubr.bf16.mxu0 %v348_v50  ;;  %v305_v57 = vsel %vm297_vm1, %v296_v52, %v290_v51  ;;  %v299_v59 = vsel %vm297_vm1, %v294_v49, %v296_v52  ;;  %v3281_v49 = vld [vmem:[#allocation7 + $0x2b0] ss:$8 sps:$4 sm:$0xff]   ;;  %v3286_v50 = vld [vmem:[#allocation7 + $0x2a4] ss:$8 sps:$4 sm:$0xff]   ;;  %v3284_v51 = vld [vmem:[#allocation7 + $0x2a0] ss:$8 sps:$4 sm:$0xff]  }
 0x121   :  { %1035 = vmatmul.mubr.bf16.gmra.mxu0 %v347_v53  ;;  %v2862_v60 = vpack.c.bf16 %v303_v56, %v305_v57  ;;  %v2868_v3 = vpack.c.bf16 %v299_v59, %v301_v0  ;;  %v3289_v52 = vld [vmem:[#allocation7 + $0x294] ss:$8 sps:$4 sm:$0xff]   ;;  %v106_v53 = vadd.s32 24, %v3803_v17  ;;  %v318_v56 = vrot.slane %v3845_v48, 1  ;;  %v3298_v14 = vld [vmem:[#allocation8 + $0x164] ss:$8 sps:$4 sm:$0xff]  }
 0x122   :  { %v321_v59 = vrot.slane %v3836_v43, 1  ;;  %v3302_v16 = vld [vmem:[#allocation8 + $0x70] ss:$8 sps:$4 sm:$0xff]  }
 0x123   :  { %2863 = vmatprep.mubr.msk.bf16.mxu1 %vm3864_vm5, %v2862_v60  ;;  %v132_v57 = vand.u32 15, %v106_v53  ;;  %v316_v60 = vrot.slane %v3816_v26, 1  ;;  %v3338_v53 = vld [vmem:[#allocation8 + $0x10] ss:$8 sps:$4 sm:$0xff]  }
 0x124   :  { %2866 = vmatmul.mubr.msk.bf16.vlgmr.msra.gmra.mxu1 %vm3864_vm5, %v2865_v63  ;;  %v324_v0 = vsel %vm322_vm7, %v319_v5, %v321_v59 }
 0x125   :  { %1046 = vmatpush1.bf16.msra.mxu1 %v3245_v61  ;;  %2869 = vmatprep.mubr.msk.bf16.mxu1 %vm3875_vm6, %v2868_v3  ;;  %v3290_v61 = vld [vmem:[#allocation7 + $0x280] ss:$8 sps:$4 sm:$0xff]   ;;  %v325_v63 = vsel %vm322_vm7, %v316_v60, %v318_v56  ;;  %vm162_vm10 = vcmp.ne.s32.totalorder %v132_v57, 15  ;;  %v327_v3 = vsel %vm322_vm7, %v314_v62, %v316_v60 }
 0x126   :  { %1047 = vmatprep.subr.bf16.mxu1 %v3250_v2  ;;  %v330_v2 = vsel %vm322_vm7, %v321_v59, %v315_v11  ;;  %v2877_v4 = vpack.c.bf16 %v325_v63, %v327_v3  ;;  %vm3929_vm11 = vmpackc.low %vm162_vm10, %vm3717_vm4  ;;  %v3293_v11 = vld [vmem:[#allocation8 + $0x170] ss:$8 sps:$4 sm:$0xff]   ;;  %v3344_v57 = vld [vmem:[#allocation8] ss:$8 sps:$4 sm:$0xff]  }
 0x127   :  { %v2880_v8 = vpack.c.bf16 %v330_v2, %v324_v0  ;;  %v3352_v59 = vld [vmem:[#allocation8 + $0xf4] ss:$8 sps:$4 sm:$0xff]   ;;  %v3341_v60 = vld [vmem:[#allocation8 + $0x1e0] ss:$8 sps:$4 sm:$0xff]   ;;  %v3358_v63 = vld [vmem:[#allocation8 + $0xe4] ss:$8 sps:$4 sm:$0xff]  }
 0x128   :  { %v3347_v0 = vld [vmem:[#allocation8 + $0x1d0] ss:$8 sps:$4 sm:$0xff]   ;;  %v3355_v2 = vld [vmem:[#allocation8 + $0x1c4] ss:$8 sps:$4 sm:$0xff]   ;;  %v3356_v3 = vld [vmem:[#allocation8 + $0xe0] ss:$8 sps:$4 sm:$0xff]  }
 0x129   :  { %1048 = vmatpush1.bf16.msra.mxu1 %v3248_v7  ;;  %v320_v7 = vrot.slane %v3832_v39, 1 }
 0x12a   :  { %1049 = vmatprep.subr.bf16.mxu1 %v3253_v9 }
 0x12b   :  { %v323_v5 = vsel %vm322_vm7, %v318_v56, %v320_v7  ;;  %v329_v9 = vsel %vm322_vm7, %v320_v7, %v314_v62  ;;  %v3343_v56 = vld [vmem:[#allocation8 + $0x1e4] ss:$8 sps:$4 sm:$0xff]   ;;  %v3350_v62 = vld [vmem:[#allocation8 + $0xf0] ss:$8 sps:$4 sm:$0xff]   ;;  %v3353_v7 = vld [vmem:[#allocation8 + $0x1c0] ss:$8 sps:$4 sm:$0xff]  }
 0x12c   :  { %2872 = vmatmul.mubr.msk.bf16.gmra.mxu1 %vm3875_vm6, %v2871_v15  ;;  %v2883_v10 = vpack.c.bf16 %v329_v9, %v323_v5  ;;  %v3301_v15 = vld [vmem:[#allocation8 + $0x154] ss:$8 sps:$4 sm:$0xff]   ;;  %v3362_v5 = vld [vmem:[#allocation8 + $0xd0] ss:$8 sps:$4 sm:$0xff]  }
 0x12d   :  { %1050 = vmatpush1.bf16.msra.mxu1 %v3251_v13  ;;  %2875 = vmatprep.mubr.msk.bf16.mxu1 %vm3903_vm9, %v2874_v22  ;;  %v3296_v13 = vld [vmem:[#allocation8 + $0x160] ss:$8 sps:$4 sm:$0xff]   ;;  %v3299_v22 = vld [vmem:[#allocation8 + $0x150] ss:$8 sps:$4 sm:$0xff]  }
 0x12e   :  { %1051 = vmatprep.subr.bf16.mxu1 %v3256_v21  ;;  %v3304_v21 = vld [vmem:[#allocation8 + $0x74] ss:$8 sps:$4 sm:$0xff]   ;;  %v3359_v9 = vld [vmem:[#allocation8 + $0x1b0] ss:$8 sps:$4 sm:$0xff]  }
 0x12f   :  { %1746 = vmatprep.subr.bf16.mxu0 %v3304_v21  ;;  %v3374_v21 = vld [vmem:[#allocation8 + $0xb0] ss:$8 sps:$4 sm:$0xff]  }
 0x130   :  { %1747 = vmatpush1.bf16.msra.mxu0 %v3302_v16  ;;  %v3376_v16 = vld [vmem:[#allocation8 + $0xb4] ss:$8 sps:$4 sm:$0xff]  }
 0x131   :  { %1052 = vmatpush1.bf16.msra.mxu1 %v3254_v23  ;;  %v3310_v23 = vld [vmem:[#allocation8 + $0x64] ss:$8 sps:$4 sm:$0xff]  }
 0x132   :  { %1053 = vmatprep.subr.bf16.mxu1 %v3259_v24  ;;  %v3307_v24 = vld [vmem:[#allocation8 + $0x144] ss:$8 sps:$4 sm:$0xff]   ;;  %1748 = vmatprep.subr.bf16.mxu0 %v3310_v23  ;;  %v3377_v23 = vld [vmem:[#allocation8 + $0x180] ss:$8 sps:$4 sm:$0xff]  }
 0x135   :  { %1054 = vmatpush1.bf16.msra.mxu1 %v3257_v25  ;;  %v3308_v25 = vld [vmem:[#allocation8 + $0x60] ss:$8 sps:$4 sm:$0xff]  }
 0x136   :  { %1055 = vmatprep.subr.bf16.mxu1 %v3262_v27  ;;  %v3316_v27 = vld [vmem:[#allocation8 + $0x54] ss:$8 sps:$4 sm:$0xff]   ;;  %1749 = vmatpush1.bf16.msra.mxu0 %v3308_v25  ;;  %v3380_v25 = vld [vmem:[#allocation8 + $0xa0] ss:$8 sps:$4 sm:$0xff]  }
 0x137   :  { %1750 = vmatprep.subr.bf16.mxu0 %v3316_v27  ;;  %v3385_v27 = vld [vmem:[#allocation8 + $0x94] ss:$8 sps:$4 sm:$0xff]  }
 0x139   :  { %1056 = vmatpush1.bf16.msra.mxu1 %v3260_v31  ;;  %v3305_v31 = vld [vmem:[#allocation8 + $0x140] ss:$8 sps:$4 sm:$0xff]  }
 0x13a   :  { %1057 = vmatprep.subr.bf16.mxu1 %v3265_v32  ;;  %v3313_v32 = vld [vmem:[#allocation8 + $0x134] ss:$8 sps:$4 sm:$0xff]  }
 0x13d   :  { %1058 = vmatpush1.bf16.msra.mxu1 %v3263_v33  ;;  %v3314_v33 = vld [vmem:[#allocation8 + $0x50] ss:$8 sps:$4 sm:$0xff]  }
 0x13e   :  { %1059 = vmatprep.subr.bf16.mxu1 %v3268_v34  ;;  %v3322_v34 = vld [vmem:[#allocation8 + $0x44] ss:$8 sps:$4 sm:$0xff]   ;;  %1751 = vmatpush1.bf16.msra.mxu0 %v3314_v33 }
 0x13f   :  { %1752 = vmatprep.subr.bf16.mxu0 %v3322_v34  ;;  %v3388_v33 = vld [vmem:[#allocation8 + $0x84] ss:$8 sps:$4 sm:$0xff]   ;;  %v3391_v34 = vld [vmem:[#allocation8 + $0x274] ss:$8 sps:$4 sm:$0xff]  }
 0x141   :  { %1060 = vmatpush1.bf16.msra.mxu1 %v3266_v35  ;;  %v3311_v35 = vld [vmem:[#allocation8 + $0x130] ss:$8 sps:$4 sm:$0xff]  }
 0x142   :  { %1061 = vmatprep.subr.bf16.mxu1 %v3271_v36  ;;  %v3319_v36 = vld [vmem:[#allocation8 + $0x124] ss:$8 sps:$4 sm:$0xff]  }
 0x145   :  { %1062 = vmatpush2.bf16.msra.mxu1 %v3269_v37  ;;  %v3320_v37 = vld [vmem:[#allocation8 + $0x40] ss:$8 sps:$4 sm:$0xff]  }
 0x146   :  { %1063 = vmatprep.subr.bf16.mxu1 %v3274_v40  ;;  %v3328_v40 = vld [vmem:[#allocation8 + $0x34] ss:$8 sps:$4 sm:$0xff]   ;;  %1753 = vmatpush1.bf16.msra.mxu0 %v3320_v37 }
 0x147   :  { %1754 = vmatprep.subr.bf16.mxu0 %v3328_v40 }
 0x149   :  { %1064 = vmatpush2.bf16.msra.mxu1 %v3272_v41  ;;  %v3317_v41 = vld [vmem:[#allocation8 + $0x120] ss:$8 sps:$4 sm:$0xff]  }
 0x14a   :  { %1065 = vmatprep.subr.bf16.mxu1 %v3277_v42  ;;  %v3325_v42 = vld [vmem:[#allocation8 + $0x114] ss:$8 sps:$4 sm:$0xff]  }
 0x14d   :  { %1066 = vmatpush2.bf16.msra.mxu1 %v3275_v44  ;;  %v3326_v44 = vld [vmem:[#allocation8 + $0x30] ss:$8 sps:$4 sm:$0xff]  }
 0x14e   :  { %1067 = vmatprep.subr.bf16.mxu1 %v3280_v45  ;;  %v3334_v45 = vld [vmem:[#allocation8 + $0x24] ss:$8 sps:$4 sm:$0xff]   ;;  %1755 = vmatpush1.bf16.msra.mxu0 %v3326_v44 }
 0x14f   :  { %1756 = vmatprep.subr.bf16.mxu0 %v3334_v45 }
 0x151   :  { %1068 = vmatpush2.bf16.msra.mxu1 %v3278_v46  ;;  %v3323_v46 = vld [vmem:[#allocation8 + $0x110] ss:$8 sps:$4 sm:$0xff]  }
 0x152   :  { %1069 = vmatprep.subr.bf16.mxu1 %v3283_v47  ;;  %v3331_v47 = vld [vmem:[#allocation8 + $0x104] ss:$8 sps:$4 sm:$0xff]  }
 0x155   :  { %1070 = vmatpush2.bf16.msra.mxu1 %v3281_v49  ;;  %v3332_v49 = vld [vmem:[#allocation8 + $0x20] ss:$8 sps:$4 sm:$0xff]  }
 0x156   :  { %1071 = vmatprep.subr.bf16.mxu1 %v3286_v50  ;;  %v3340_v50 = vld [vmem:[#allocation8 + $0x14] ss:$8 sps:$4 sm:$0xff]   ;;  %1757 = vmatpush1.bf16.msra.mxu0 %v3332_v49  ;;  %v447_v49 = vld [vmem:[%s4177_s4] sm:$0x3] }
 0x157   :  { %1758 = vmatprep.subr.bf16.mxu0 %v3340_v50 }
 0x159   :  { %1072 = vmatpush2.bf16.msra.mxu1 %v3284_v51  ;;  %v3329_v51 = vld [vmem:[#allocation8 + $0x100] ss:$8 sps:$4 sm:$0xff]  }
 0x15a   :  { %1073 = vmatprep.subr.bf16.mxu1 %v3289_v52  ;;  %v3337_v52 = vld [vmem:[#allocation8 + $0x1f4] ss:$8 sps:$4 sm:$0xff]   ;;  %1759 = vmatpush1.bf16.msra.mxu0 %v3338_v53 }
 0x15d   :  { %1074 = vmatpush2.bf16.msra.mxu1 %v3287_v54  ;;  %v3346_v54 = vld [vmem:[#allocation8 + $0x4] ss:$8 sps:$4 sm:$0xff]  }
 0x15e   :  { %1075 = vmatprep.subr.bf16.mxu1 %v3292_v55  ;;  %v3335_v55 = vld [vmem:[#allocation8 + $0x1f0] ss:$8 sps:$4 sm:$0xff]   ;;  %1760 = vmatprep.subr.bf16.mxu0 %v3346_v54 }
 0x15f   :  { %1761 = vmatpush1.bf16.msra.mxu0 %v3344_v57 }
 0x160   :  { %1762 = vmatprep.subr.bf16.mxu0 %v3352_v59 }
 0x161   :  { %1076 = vmatpush2.bf16.msra.mxu1 %v3290_v61  ;;  %v3349_v61 = vld [vmem:[#allocation8 + $0x1d4] ss:$8 sps:$4 sm:$0xff]  }
 0x162   :  { %1799 = vmatprep.subr.bf16.mxu1 %v3295_v12  ;;  %v3370_v12 = vld [vmem:[#allocation8 + $0xc4] ss:$8 sps:$4 sm:$0xff]  }
 0x163   :  { %1763 = vmatpush2.bf16.msra.mxu0 %v3350_v62 }
 0x164   :  { %2878 = vmatmul.mubr.msk.bf16.vlgmr.msra.gmra.mxu1 %vm3903_vm9, %v2877_v4  ;;  %1764 = vmatprep.subr.bf16.mxu0 %v3358_v63  ;;  %v3364_v4 = vld [vmem:[#allocation8 + $0xd4] ss:$8 sps:$4 sm:$0xff]  }
 0x165   :  { %2881 = vmatprep.mubr.msk.bf16.mxu1 %vm3929_vm11, %v2880_v8  ;;  %1800 = vmatpush1.bf16.msra.mxu1 %v3293_v11  ;;  %v3361_v8 = vld [vmem:[#allocation8 + $0x1b4] ss:$8 sps:$4 sm:$0xff]   ;;  %v3365_v11 = vld [vmem:[#allocation8 + $0x1a0] ss:$8 sps:$4 sm:$0xff]  }
 0x166   :  { %1801 = vmatprep.subr.bf16.mxu1 %v3298_v14  ;;  %v3373_v14 = vld [vmem:[#allocation8 + $0x194] ss:$8 sps:$4 sm:$0xff]  }
 0x167   :  { %1765 = vmatpush2.bf16.msra.mxu0 %v3356_v3 }
 0x168   :  { %1766 = vmatprep.subr.bf16.mxu0 %v3364_v4 }
 0x169   :  { %1802 = vmatpush1.bf16.msra.mxu1 %v3296_v13  ;;  %v3368_v13 = vld [vmem:[#allocation8 + $0xc0] ss:$8 sps:$4 sm:$0xff]  }
 0x16a   :  { %1803 = vmatprep.subr.bf16.mxu1 %v3301_v15  ;;  %v3371_v15 = vld [vmem:[#allocation8 + $0x190] ss:$8 sps:$4 sm:$0xff]  }
 0x16b   :  { %1767 = vmatpush2.bf16.msra.mxu0 %v3362_v5 }
 0x16c   :  { %2884 = vmatmul.mubr.msk.bf16.gmra.mxu1 %vm3929_vm11, %v2883_v10  ;;  %v3367_v10 = vld [vmem:[#allocation8 + $0x1a4] ss:$8 sps:$4 sm:$0xff]   ;;  %1768 = vmatprep.subr.bf16.mxu0 %v3370_v12 }
 0x16d   :  { %1804 = vmatpush1.bf16.msra.mxu1 %v3299_v22  ;;  %v3379_v22 = vld [vmem:[#allocation8 + $0x184] ss:$8 sps:$4 sm:$0xff]  }
 0x16e   :  { %1805 = vmatprep.subr.bf16.mxu1 %v3307_v24  ;;  %v3382_v24 = vld [vmem:[#allocation8 + $0xa4] ss:$8 sps:$4 sm:$0xff]  }
 0x16f   :  { %1769 = vmatpush2.bf16.msra.mxu0 %v3368_v13 }
 0x170   :  { %1770 = vmatprep.subr.bf16.mxu0 %v3376_v16 }
 0x171   :  { %1806 = vmatpush1.bf16.msra.mxu1 %v3305_v31  ;;  %v3383_v31 = vld [vmem:[#allocation8 + $0x90] ss:$8 sps:$4 sm:$0xff]  }
 0x172   :  { %1807 = vmatprep.subr.bf16.mxu1 %v3313_v32  ;;  %v3386_v32 = vld [vmem:[#allocation8 + $0x80] ss:$8 sps:$4 sm:$0xff]  }
 0x173   :  { %1771 = vmatpush2.bf16.msra.mxu0 %v3374_v21 }
 0x174   :  { %1772 = vmatprep.subr.bf16.mxu0 %v3382_v24 }
 0x175   :  { %1808 = vmatpush1.bf16.msra.mxu1 %v3311_v35 }
 0x176   :  { %1809 = vmatprep.subr.bf16.mxu1 %v3319_v36 }
 0x177   :  { %1773 = vmatpush2.bf16.msra.mxu0 %v3380_v25 }
 0x178   :  { %1774 = vmatprep.subr.bf16.mxu0 %v3385_v27 }
 0x179   :  { %1810 = vmatpush1.bf16.msra.mxu1 %v3317_v41 }
 0x17a   :  { %1811 = vmatprep.subr.bf16.mxu1 %v3325_v42 }
 0x17b   :  { %1775 = vmatpush2.bf16.msra.mxu0 %v3383_v31 }
 0x17c   :  { %1776 = vmatprep.subr.bf16.mxu0 %v3388_v33 }
 0x17d   :  { %1812 = vmatpush1.bf16.msra.mxu1 %v3323_v46 }
 0x17e   :  { %1813 = vmatprep.subr.bf16.mxu1 %v3331_v47 }
 0x17f   :  { %1777 = vmatpush2.bf16.msra.mxu0 %v3386_v32 }
 0x180   :  { %1852 = vmatprep.subr.bf16.mxu0 %v3391_v34 }
 0x181   :  { %1814 = vmatpush1.bf16.msra.mxu1 %v3329_v51  ;;  %v452_v51 = vrot.slane %v447_v49, %v3809_v19 }
 0x182   :  { %1815 = vmatprep.subr.bf16.mxu1 %v3337_v52  ;;  %v456_v52 = vrot.slane %v447_v49, %v3806_v18 }
 0x185   :  { %1816 = vmatpush2.bf16.msra.mxu1 %v3335_v55 }
 0x186   :  { %1817 = vmatprep.subr.bf16.mxu1 %v3343_v56 }
 0x189   :  { %1818 = vmatpush2.bf16.msra.mxu1 %v3341_v60 }
 0x18a   :  { %1819 = vmatprep.subr.bf16.mxu1 %v3349_v61 }
 0x18d   :  { %1820 = vmatpush2.bf16.msra.mxu1 %v3347_v0 }
 0x18e   :  { %1821 = vmatprep.subr.bf16.mxu1 %v3355_v2 }
 0x191   :  { %1822 = vmatpush2.bf16.msra.mxu1 %v3353_v7 }
 0x192   :  { %1823 = vmatprep.subr.bf16.mxu1 %v3361_v8 }
 0x195   :  { %1824 = vmatpush2.bf16.msra.mxu1 %v3359_v9 }
 0x196   :  { %1825 = vmatprep.subr.bf16.mxu1 %v3367_v10 }
 0x199   :  { %1826 = vmatpush2.bf16.msra.mxu1 %v3365_v11 }
 0x19a   :  { %1827 = vmatprep.subr.bf16.mxu1 %v3373_v14 }
 0x19d   :  { %1828 = vmatpush2.bf16.msra.mxu1 %v3371_v15 }
 0x19e   :  { %1829 = vmatprep.subr.bf16.mxu1 %v3379_v22 }
 0x1a1   :  { %1830 = vmatpush2.bf16.msra.mxu1 %v3377_v23 }
 0x1d9   :  { %v1026_v41 = vpop.f32.mrf.mxu0 }
 0x1db   :  { %v1028_v44 = vpop.f32.mrf.mxu0 }
 0x1dd   :  { %v1030_v46 = vpop.f32.mrf.mxu0 }
 0x1df   :  { %v1032_v50 = vpop.f32.mrf.mxu0 }
 0x1e1   :  { %v1036_v54 = vpop.f32.mrf.mxu0 }
 0x1e3   :  { %v1038_v62 = vpop.f32.mrf.mxu0 }
 0x1e4   :  { %v973_v35 = vpop.f32.mrf.mxu1 }
 0x1e5   :  { %v974_v59 = vadd.f32 %v973_v35, %v452_v51  ;;  %v1040_v11 = vpop.f32.mrf.mxu0 }
 0x1e6   :  { %v975_v36 = vpop.f32.mrf.mxu1 }
 0x1e7   :  { %v976_v60 = vadd.f32 %v975_v36, %v456_v52  ;;  %v1027_v3 = vadd.f32 %v1026_v41, %v974_v59  ;;  %v1042_v27 = vpop.f32.mrf.mxu0  ;;  %v3389_v59 = vld [vmem:[#allocation8 + $0x270] ss:$8 sps:$4 sm:$0xff]  }
 0x1e8   :  { %v977_v37 = vpop.f32.mrf.mxu1 }
 0x1e9   :  { %v978_v56 = vadd.f32 %v977_v37, %v452_v51  ;;  %v1029_v4 = vadd.f32 %v1028_v44, %v976_v60 }
 0x1ea   :  { %v979_v40 = vpop.f32.mrf.mxu1 }
 0x1eb   :  { %v980_v57 = vadd.f32 %v979_v40, %v456_v52  ;;  %v1031_v0 = vadd.f32 %v1030_v46, %v978_v56 }
 0x1ec   :  { %v983_v42 = vpop.f32.mrf.mxu1 }
 0x1ed   :  { %v1033_v2 = vadd.f32 %v1032_v50, %v980_v57  ;;  %v984_v22 = vadd.f32 %v983_v42, %v452_v51 }
 0x1ee   :  { %v985_v45 = vpop.f32.mrf.mxu1 }
 0x1ef   :  { %v986_v8 = vadd.f32 %v985_v45, %v456_v52  ;;  %v1037_v37 = vadd.f32 %v1036_v54, %v984_v22  ;;  %v3400_v22 = vld [vmem:[#allocation8 + $0x244] ss:$8 sps:$4 sm:$0xff]  }
 0x1f0   :  { %v987_v47 = vpop.f32.mrf.mxu1 }
 0x1f1   :  { %v988_v5 = vadd.f32 %v987_v47, %v452_v51  ;;  %v1039_v24 = vadd.f32 %v1038_v62, %v986_v8  ;;  %v3394_v62 = vld [vmem:[#allocation8 + $0x264] ss:$8 sps:$4 sm:$0xff]  }
 0x1f2   :  { %v989_v53 = vpop.f32.mrf.mxu1 }
 0x1f3   :  { %v990_v14 = vadd.f32 %v989_v53, %v456_v52  ;;  %v1041_v25 = vadd.f32 %v1040_v11, %v988_v5 }
 0x1f5   :  { %v1043_v34 = vadd.f32 %v1042_v27, %v990_v14  ;;  %v3401_v27 = vld [vmem:[#allocation8 + $0x230] ss:$8 sps:$4 sm:$0xff]  }
 0x224   :  { %v1079_v55 = vpop.f32.mrf.mxu1 }
 0x225   :  { %v3955_v15 = vadd.f32 %v1079_v55, %v1027_v3  ;;  %v3392_v3 = vld [vmem:[#allocation8 + $0x260] ss:$8 sps:$4 sm:$0xff]  }
 0x226   :  { %v1081_v61 = vpop.f32.mrf.mxu1 }
 0x227   :  { %v3953_v12 = vadd.f32 %v1081_v61, %v1029_v4  ;;  %v1098_v42 = vrot.slane %v3955_v15, 7 }
 0x228   :  { %v1083_v63 = vpop.f32.mrf.mxu1 }
 0x229   :  { %v3949_v9 = vadd.f32 %v1083_v63, %v1031_v0  ;;  %v1099_v44 = vrot.slane %v3953_v12, 7  ;;  %v1123_v5 = vrot.slane %v3953_v12, 1 }
 0x22a   :  { %v1085_v7 = vpop.f32.mrf.mxu1 }
 0x22b   :  { %v3951_v10 = vadd.f32 %v1085_v7, %v1033_v2  ;;  %v1148_v23 = vpack.c.bf16 %v3949_v9, %v3955_v15  ;;  %v1100_v45 = vrot.slane %v3949_v9, 7  ;;  %v3397_v7 = vld [vmem:[#allocation8 + $0x254] ss:$8 sps:$4 sm:$0xff]  }
 0x22c   :  { %v1089_v13 = vpop.f32.mrf.mxu1 }
 0x22d   :  { %v1149_v21 = vpack.c.bf16 %v3951_v10, %v3953_v12  ;;  %v1101_v36 = vrot.slane %v3951_v10, 7  ;;  %v3972_v46 = vadd.f32 %v1089_v13, %v1037_v37  ;;  %v1110_v56 = vsel %vm297_vm1, %v1098_v42, %v1100_v45  ;;  %v3395_v13 = vld [vmem:[#allocation8 + $0x250] ss:$8 sps:$4 sm:$0xff]   ;;  %v3412_v37 = vld [vmem:[#allocation8 + $0x204] ss:$8 sps:$4 sm:$0xff]  }
 0x22e   :  { %v1091_v16 = vpop.f32.mrf.mxu1  ;;  %v1125_v4 = vrot.slane %v3951_v10, 1 }
 0x22f   :  { %1831 = vmatprep.mubr.bf16.mxu1 %v1149_v21  ;;  %v3961_v32 = vadd.f32 %v1091_v16, %v1039_v24  ;;  %v1111_v53 = vsel %vm297_vm1, %v1099_v44, %v1101_v36  ;;  %v1102_v2 = vrot.slane %v3972_v46, 7  ;;  %v3398_v24 = vld [vmem:[#allocation8 + $0x240] ss:$8 sps:$4 sm:$0xff]  }
 0x230   :  { %v1093_v31 = vpop.f32.mrf.mxu1  ;;  %1832 = vmatmul.mubr.bf16.vlgmr.msra.gmra.mxu1 %v1148_v23  ;;  %v1135_v21 = vsel %vm322_vm7, %v1123_v5, %v1125_v4 }
 0x231   :  { %v3963_v33 = vadd.f32 %v1093_v31, %v1041_v25  ;;  %v1103_v47 = vrot.slane %v3961_v32, 7  ;;  %v1127_v0 = vrot.slane %v3961_v32, 1  ;;  %v1108_v14 = vsel %vm297_vm1, %v1100_v45, %v1102_v2  ;;  %v3403_v25 = vld [vmem:[#allocation8 + $0x234] ss:$8 sps:$4 sm:$0xff]   ;;  %v3406_v31 = vld [vmem:[#allocation8 + $0x224] ss:$8 sps:$4 sm:$0xff]  }
 0x232   :  { %v1095_v35 = vpop.f32.mrf.mxu1  ;;  %v3418_v45 = vld [vmem:[#allocation8 + $0x2e4] ss:$8 sps:$4 sm:$0xff]  }
 0x233   :  { %v1104_v40 = vrot.slane %v3963_v33, 7  ;;  %v3967_v41 = vadd.f32 %v1095_v35, %v1043_v34  ;;  %v1154_v52 = vpack.c.bf16 %v3963_v33, %v3972_v46  ;;  %v1109_v61 = vsel %vm297_vm1, %v1101_v36, %v1103_v47  ;;  %v3404_v34 = vld [vmem:[#allocation8 + $0x220] ss:$8 sps:$4 sm:$0xff]   ;;  %v3409_v35 = vld [vmem:[#allocation8 + $0x214] ss:$8 sps:$4 sm:$0xff]  }
 0x234   :  { %v1133_v11 = vsel %vm322_vm7, %v1125_v4, %v1127_v0  ;;  %v3407_v36 = vld [vmem:[#allocation8 + $0x210] ss:$8 sps:$4 sm:$0xff]  }
 0x235   :  { %v1105_v49 = vrot.slane %v3967_v41, 7  ;;  %v1155_v50 = vpack.c.bf16 %v3967_v41, %v3961_v32  ;;  %v1112_v51 = vsel %vm297_vm1, %v1104_v40, %v1098_v42  ;;  %v1106_v8 = vsel %vm297_vm1, %v1102_v2, %v1104_v40  ;;  %v3410_v40 = vld [vmem:[#allocation8 + $0x200] ss:$8 sps:$4 sm:$0xff]   ;;  %v3415_v42 = vld [vmem:[#allocation8 + $0x2f4] ss:$8 sps:$4 sm:$0xff]  }
 0x236   :  { %v2985_v60 = vpack.c.bf16 %v1110_v56, %v1112_v51  ;;  %v2991_v16 = vpack.c.bf16 %v1106_v8, %v1108_v14  ;;  %v2994_v23 = vpack.c.bf16 %v1133_v11, %v1135_v21  ;;  %v3424_v51 = vld [vmem:[#allocation8 + $0x2c4] ss:$8 sps:$4 sm:$0xff]   ;;  %v3428_v56 = vld [vmem:[#allocation8 + $0x2a0] ss:$8 sps:$4 sm:$0xff]   ;;  %v1128_v14 = vrot.slane %v3963_v33, 1 }
 0x237   :  { %1841 = vmatprep.mubr.bf16.mxu1 %v1155_v50  ;;  %v1113_v54 = vsel %vm297_vm1, %v1105_v49, %v1099_v44  ;;  %v1107_v55 = vsel %vm297_vm1, %v1103_v47, %v1105_v49  ;;  %v3413_v44 = vld [vmem:[#allocation8 + $0x2f0] ss:$8 sps:$4 sm:$0xff]   ;;  %v3416_v47 = vld [vmem:[#allocation8 + $0x2e0] ss:$8 sps:$4 sm:$0xff]   ;;  %v3421_v49 = vld [vmem:[#allocation8 + $0x2d4] ss:$8 sps:$4 sm:$0xff]  }
 0x238   :  { %v2982_v57 = vpack.c.bf16 %v1111_v53, %v1113_v54  ;;  %1842 = vmatmul.mubr.bf16.gmra.mxu1 %v1154_v52  ;;  %v2988_v63 = vpack.c.bf16 %v1107_v55, %v1109_v61  ;;  %v3419_v50 = vld [vmem:[#allocation8 + $0x2d0] ss:$8 sps:$4 sm:$0xff]   ;;  %v3422_v52 = vld [vmem:[#allocation8 + $0x2c0] ss:$8 sps:$4 sm:$0xff]   ;;  %v3427_v53 = vld [vmem:[#allocation8 + $0x2b4] ss:$8 sps:$4 sm:$0xff]  }
 0x239   :  { %v3425_v54 = vld [vmem:[#allocation8 + $0x2b0] ss:$8 sps:$4 sm:$0xff]   ;;  %v3430_v55 = vld [vmem:[#allocation8 + $0x2a4] ss:$8 sps:$4 sm:$0xff]   ;;  %v1126_v61 = vrot.slane %v3972_v46, 1 }
 0x23a   :  { %2983 = vmatprep.mubr.msk.bf16.mxu0 %vm3864_vm5, %v2982_v57  ;;  %v3433_v57 = vld [vmem:[#allocation8 + $0x294] ss:$8 sps:$4 sm:$0xff]   ;;  %v3434_v2 = vld [vmem:[#allocation8 + $0x280] ss:$8 sps:$4 sm:$0xff]  }
 0x23b   :  { %2986 = vmatmul.mubr.msk.bf16.vlgmr.msra.gmra.mxu0 %vm3864_vm5, %v2985_v60  ;;  %v3436_v60 = vld [vmem:[#allocation8 + $0x284] ss:$8 sps:$4 sm:$0xff]  }
 0x23c   :  { %1853 = vmatpush1.bf16.msra.mxu0 %v3389_v59  ;;  %2989 = vmatprep.mubr.msk.bf16.mxu0 %vm3875_vm6, %v2988_v63  ;;  %v3431_v59 = vld [vmem:[#allocation8 + $0x290] ss:$8 sps:$4 sm:$0xff]   ;;  %v1124_v63 = vrot.slane %v3949_v9, 1 }
 0x23d   :  { %1854 = vmatprep.subr.bf16.mxu0 %v3394_v62  ;;  %v1129_v62 = vrot.slane %v3967_v41, 1 }
 0x23e   :  { %v1132_v4 = vsel %vm322_vm7, %v1124_v63, %v1126_v61 }
 0x23f   :  { %v1137_v8 = vsel %vm322_vm7, %v1129_v62, %v1123_v5 }
 0x240   :  { %1855 = vmatpush1.bf16.msra.mxu0 %v3392_v3  ;;  %v1122_v3 = vrot.slane %v3955_v15, 1 }
 0x241   :  { %1856 = vmatprep.subr.bf16.mxu0 %v3397_v7  ;;  %v1131_v7 = vsel %vm322_vm7, %v1127_v0, %v1129_v62  ;;  %v1130_v0 = vsel %vm322_vm7, %v1126_v61, %v1128_v14  ;;  %v3484_v61 = vld [vmem:[#allocation10 + $0x14] ss:$8 sps:$4 sm:$0xff]   ;;  %v3475_v62 = vld [vmem:[#allocation10 + $0x104] ss:$8 sps:$4 sm:$0xff]  }
 0x242   :  { %v1134_v11 = vsel %vm322_vm7, %v1122_v3, %v1124_v63  ;;  %v1136_v5 = vsel %vm322_vm7, %v1128_v14, %v1122_v3  ;;  %v3482_v63 = vld [vmem:[#allocation10 + $0x10] ss:$8 sps:$4 sm:$0xff]   ;;  %v3490_v3 = vld [vmem:[#allocation10 + $0x4] ss:$8 sps:$4 sm:$0xff]  }
 0x243   :  { %2992 = vmatmul.mubr.msk.bf16.gmra.mxu0 %vm3875_vm6, %v2991_v16  ;;  %v3000_v16 = vpack.c.bf16 %v1137_v8, %v1131_v7  ;;  %v3003_v21 = vpack.c.bf16 %v1136_v5, %v1130_v0  ;;  %v3488_v7 = vld [vmem:[#allocation10] ss:$8 sps:$4 sm:$0xff]   ;;  %v3479_v8 = vld [vmem:[#allocation10 + $0x1f0] ss:$8 sps:$4 sm:$0xff]   ;;  %v3502_v0 = vld [vmem:[#allocation10 + $0xe4] ss:$8 sps:$4 sm:$0xff]  }
 0x244   :  { %1857 = vmatpush1.bf16.msra.mxu0 %v3395_v13  ;;  %2995 = vmatprep.mubr.msk.bf16.mxu0 %vm3903_vm9, %v2994_v23  ;;  %v2997_v13 = vpack.c.bf16 %v1132_v4, %v1134_v11  ;;  %v3439_v23 = vld [vmem:[#allocation10 + $0x174] ss:$8 sps:$4 sm:$0xff]   ;;  %v3494_v14 = vld [vmem:[#allocation10 + $0xf0] ss:$8 sps:$4 sm:$0xff]  }
 0x245   :  { %1858 = vmatprep.subr.bf16.mxu0 %v3400_v22  ;;  %v3437_v22 = vld [vmem:[#allocation10 + $0x170] ss:$8 sps:$4 sm:$0xff]   ;;  %v3481_v4 = vld [vmem:[#allocation10 + $0x1f4] ss:$8 sps:$4 sm:$0xff]  }
 0x246   :  { %v3496_v11 = vld [vmem:[#allocation10 + $0xf4] ss:$8 sps:$4 sm:$0xff]  }
 0x247   :  { %v3493_v5 = vld [vmem:[#allocation10 + $0x1d4] ss:$8 sps:$4 sm:$0xff]  }
 0x248   :  { %1859 = vmatpush1.bf16.msra.mxu0 %v3398_v24  ;;  %v3442_v24 = vld [vmem:[#allocation10 + $0x164] ss:$8 sps:$4 sm:$0xff]  }
 0x249   :  { %1860 = vmatprep.subr.bf16.mxu0 %v3403_v25  ;;  %v3440_v25 = vld [vmem:[#allocation10 + $0x160] ss:$8 sps:$4 sm:$0xff]  }
 0x24c   :  { %1861 = vmatpush1.bf16.msra.mxu0 %v3401_v27  ;;  %v3446_v27 = vld [vmem:[#allocation10 + $0x70] ss:$8 sps:$4 sm:$0xff]  }
 0x24d   :  { %1862 = vmatprep.subr.bf16.mxu0 %v3406_v31  ;;  %v3448_v31 = vld [vmem:[#allocation10 + $0x74] ss:$8 sps:$4 sm:$0xff]  }
 0x24e   :  { %2561 = vmatprep.subr.bf16.mxu1 %v3448_v31  ;;  %v3508_v31 = vld [vmem:[#allocation10 + $0xd4] ss:$8 sps:$4 sm:$0xff]  }
 0x24f   :  { %2562 = vmatpush1.bf16.msra.mxu1 %v3446_v27  ;;  %v3503_v27 = vld [vmem:[#allocation10 + $0x1b0] ss:$8 sps:$4 sm:$0xff]  }
 0x250   :  { %1863 = vmatpush1.bf16.msra.mxu0 %v3404_v34  ;;  %v3445_v34 = vld [vmem:[#allocation10 + $0x154] ss:$8 sps:$4 sm:$0xff]  }
 0x251   :  { %1864 = vmatprep.subr.bf16.mxu0 %v3409_v35  ;;  %v3454_v35 = vld [vmem:[#allocation10 + $0x64] ss:$8 sps:$4 sm:$0xff]  }
 0x252   :  { %2563 = vmatprep.subr.bf16.mxu1 %v3454_v35  ;;  %v3511_v35 = vld [vmem:[#allocation10 + $0x1a4] ss:$8 sps:$4 sm:$0xff]  }
 0x254   :  { %1865 = vmatpush1.bf16.msra.mxu0 %v3407_v36  ;;  %v3452_v36 = vld [vmem:[#allocation10 + $0x60] ss:$8 sps:$4 sm:$0xff]  }
 0x255   :  { %1866 = vmatprep.subr.bf16.mxu0 %v3412_v37  ;;  %v3443_v37 = vld [vmem:[#allocation10 + $0x150] ss:$8 sps:$4 sm:$0xff]   ;;  %2564 = vmatpush1.bf16.msra.mxu1 %v3452_v36  ;;  %v3509_v36 = vld [vmem:[#allocation10 + $0x1a0] ss:$8 sps:$4 sm:$0xff]  }
 0x258   :  { %1867 = vmatpush1.bf16.msra.mxu0 %v3410_v40  ;;  %v3460_v40 = vld [vmem:[#allocation10 + $0x54] ss:$8 sps:$4 sm:$0xff]  }
 0x259   :  { %1868 = vmatprep.subr.bf16.mxu0 %v3415_v42  ;;  %v3451_v42 = vld [vmem:[#allocation10 + $0x144] ss:$8 sps:$4 sm:$0xff]   ;;  %2565 = vmatprep.subr.bf16.mxu1 %v3460_v40  ;;  %v3512_v40 = vld [vmem:[#allocation10 + $0xc0] ss:$8 sps:$4 sm:$0xff]  }
 0x25c   :  { %1869 = vmatpush2.bf16.msra.mxu0 %v3413_v44  ;;  %v3458_v44 = vld [vmem:[#allocation10 + $0x50] ss:$8 sps:$4 sm:$0xff]  }
 0x25d   :  { %1870 = vmatprep.subr.bf16.mxu0 %v3418_v45  ;;  %v3449_v45 = vld [vmem:[#allocation10 + $0x140] ss:$8 sps:$4 sm:$0xff]   ;;  %2566 = vmatpush1.bf16.msra.mxu1 %v3458_v44  ;;  %v3515_v44 = vld [vmem:[#allocation10 + $0x190] ss:$8 sps:$4 sm:$0xff]  }
 0x260   :  { %1871 = vmatpush2.bf16.msra.mxu0 %v3416_v47  ;;  %v3466_v47 = vld [vmem:[#allocation10 + $0x44] ss:$8 sps:$4 sm:$0xff]  }
 0x261   :  { %1872 = vmatprep.subr.bf16.mxu0 %v3421_v49  ;;  %v3457_v49 = vld [vmem:[#allocation10 + $0x134] ss:$8 sps:$4 sm:$0xff]   ;;  %2567 = vmatprep.subr.bf16.mxu1 %v3466_v47  ;;  %v3518_v47 = vld [vmem:[#allocation10 + $0xb0] ss:$8 sps:$4 sm:$0xff]  }
 0x264   :  { %1873 = vmatpush2.bf16.msra.mxu0 %v3419_v50  ;;  %v3464_v50 = vld [vmem:[#allocation10 + $0x40] ss:$8 sps:$4 sm:$0xff]  }
 0x265   :  { %1874 = vmatprep.subr.bf16.mxu0 %v3424_v51  ;;  %v3455_v51 = vld [vmem:[#allocation10 + $0x130] ss:$8 sps:$4 sm:$0xff]   ;;  %2568 = vmatpush1.bf16.msra.mxu1 %v3464_v50  ;;  %v3521_v50 = vld [vmem:[#allocation10 + $0x180] ss:$8 sps:$4 sm:$0xff]  }
 0x268   :  { %1875 = vmatpush2.bf16.msra.mxu0 %v3422_v52  ;;  %v3472_v52 = vld [vmem:[#allocation10 + $0x34] ss:$8 sps:$4 sm:$0xff]  }
 0x269   :  { %1876 = vmatprep.subr.bf16.mxu0 %v3427_v53  ;;  %v3463_v53 = vld [vmem:[#allocation10 + $0x124] ss:$8 sps:$4 sm:$0xff]   ;;  %2569 = vmatprep.subr.bf16.mxu1 %v3472_v52  ;;  %v3524_v52 = vld [vmem:[#allocation10 + $0xa0] ss:$8 sps:$4 sm:$0xff]  }
 0x26c   :  { %1877 = vmatpush2.bf16.msra.mxu0 %v3425_v54  ;;  %v3470_v54 = vld [vmem:[#allocation10 + $0x30] ss:$8 sps:$4 sm:$0xff]  }
 0x26d   :  { %1878 = vmatprep.subr.bf16.mxu0 %v3430_v55  ;;  %v3461_v55 = vld [vmem:[#allocation10 + $0x120] ss:$8 sps:$4 sm:$0xff]   ;;  %2570 = vmatpush1.bf16.msra.mxu1 %v3470_v54  ;;  %v3527_v54 = vld [vmem:[#allocation10 + $0x90] ss:$8 sps:$4 sm:$0xff]  }
 0x270   :  { %1879 = vmatpush2.bf16.msra.mxu0 %v3428_v56  ;;  %v3478_v56 = vld [vmem:[#allocation10 + $0x24] ss:$8 sps:$4 sm:$0xff]  }
 0x271   :  { %1880 = vmatprep.subr.bf16.mxu0 %v3433_v57  ;;  %v3469_v57 = vld [vmem:[#allocation10 + $0x114] ss:$8 sps:$4 sm:$0xff]   ;;  %2571 = vmatprep.subr.bf16.mxu1 %v3478_v56  ;;  %v3532_v56 = vld [vmem:[#allocation10 + $0x84] ss:$8 sps:$4 sm:$0xff]  }
 0x274   :  { %1881 = vmatpush2.bf16.msra.mxu0 %v3431_v59  ;;  %v3476_v59 = vld [vmem:[#allocation10 + $0x20] ss:$8 sps:$4 sm:$0xff]  }
 0x275   :  { %1882 = vmatprep.subr.bf16.mxu0 %v3436_v60  ;;  %v3467_v60 = vld [vmem:[#allocation10 + $0x110] ss:$8 sps:$4 sm:$0xff]   ;;  %2572 = vmatpush1.bf16.msra.mxu1 %v3476_v59 }
 0x276   :  { %2573 = vmatprep.subr.bf16.mxu1 %v3484_v61 }
 0x278   :  { %1883 = vmatpush2.bf16.msra.mxu0 %v3434_v2  ;;  %v3473_v2 = vld [vmem:[#allocation10 + $0x100] ss:$8 sps:$4 sm:$0xff]  }
 0x279   :  { %2614 = vmatprep.subr.bf16.mxu0 %v3439_v23  ;;  %2574 = vmatpush1.bf16.msra.mxu1 %v3482_v63  ;;  %v3499_v23 = vld [vmem:[#allocation10 + $0x1c4] ss:$8 sps:$4 sm:$0xff]  }
 0x27a   :  { %2575 = vmatprep.subr.bf16.mxu1 %v3490_v3 }
 0x27b   :  { %2998 = vmatmul.mubr.msk.bf16.vlgmr.msra.gmra.mxu0 %vm3903_vm9, %v2997_v13  ;;  %v3487_v13 = vld [vmem:[#allocation10 + $0x1e4] ss:$8 sps:$4 sm:$0xff]  }
 0x27c   :  { %3001 = vmatprep.mubr.msk.bf16.mxu0 %vm3929_vm11, %v3000_v16  ;;  %2615 = vmatpush1.bf16.msra.mxu0 %v3437_v22  ;;  %v3485_v16 = vld [vmem:[#allocation10 + $0x1e0] ss:$8 sps:$4 sm:$0xff]   ;;  %v3491_v22 = vld [vmem:[#allocation10 + $0x1d0] ss:$8 sps:$4 sm:$0xff]  }
 0x27d   :  { %2616 = vmatprep.subr.bf16.mxu0 %v3442_v24  ;;  %2576 = vmatpush1.bf16.msra.mxu1 %v3488_v7  ;;  %v3497_v24 = vld [vmem:[#allocation10 + $0x1c0] ss:$8 sps:$4 sm:$0xff]  }
 0x27e   :  { %2577 = vmatprep.subr.bf16.mxu1 %v3496_v11 }
 0x280   :  { %2617 = vmatpush1.bf16.msra.mxu0 %v3440_v25  ;;  %v3505_v25 = vld [vmem:[#allocation10 + $0x1b4] ss:$8 sps:$4 sm:$0xff]  }
 0x281   :  { %2618 = vmatprep.subr.bf16.mxu0 %v3445_v34  ;;  %2578 = vmatpush2.bf16.msra.mxu1 %v3494_v14  ;;  %v3506_v34 = vld [vmem:[#allocation10 + $0xd0] ss:$8 sps:$4 sm:$0xff]  }
 0x282   :  { %2579 = vmatprep.subr.bf16.mxu1 %v3502_v0 }
 0x283   :  { %3004 = vmatmul.mubr.msk.bf16.gmra.mxu0 %vm3929_vm11, %v3003_v21  ;;  %v3500_v21 = vld [vmem:[#allocation10 + $0xe0] ss:$8 sps:$4 sm:$0xff]  }
 0x284   :  { %2619 = vmatpush1.bf16.msra.mxu0 %v3443_v37  ;;  %v3514_v37 = vld [vmem:[#allocation10 + $0xc4] ss:$8 sps:$4 sm:$0xff]  }
 0x285   :  { %2620 = vmatprep.subr.bf16.mxu0 %v3451_v42  ;;  %2580 = vmatpush2.bf16.msra.mxu1 %v3500_v21  ;;  %v3517_v42 = vld [vmem:[#allocation10 + $0x194] ss:$8 sps:$4 sm:$0xff]  }
 0x286   :  { %2581 = vmatprep.subr.bf16.mxu1 %v3508_v31 }
 0x288   :  { %2621 = vmatpush1.bf16.msra.mxu0 %v3449_v45  ;;  %v3520_v45 = vld [vmem:[#allocation10 + $0xb4] ss:$8 sps:$4 sm:$0xff]  }
 0x289   :  { %2622 = vmatprep.subr.bf16.mxu0 %v3457_v49  ;;  %2582 = vmatpush2.bf16.msra.mxu1 %v3506_v34  ;;  %v3523_v49 = vld [vmem:[#allocation10 + $0x184] ss:$8 sps:$4 sm:$0xff]  }
 0x28a   :  { %2583 = vmatprep.subr.bf16.mxu1 %v3514_v37 }
 0x28c   :  { %2623 = vmatpush1.bf16.msra.mxu0 %v3455_v51  ;;  %v3526_v51 = vld [vmem:[#allocation10 + $0xa4] ss:$8 sps:$4 sm:$0xff]  }
 0x28d   :  { %2624 = vmatprep.subr.bf16.mxu0 %v3463_v53  ;;  %2584 = vmatpush2.bf16.msra.mxu1 %v3512_v40  ;;  %v3529_v53 = vld [vmem:[#allocation10 + $0x94] ss:$8 sps:$4 sm:$0xff]  }
 0x28e   :  { %2585 = vmatprep.subr.bf16.mxu1 %v3520_v45 }
 0x290   :  { %2625 = vmatpush1.bf16.msra.mxu0 %v3461_v55  ;;  %v3530_v55 = vld [vmem:[#allocation10 + $0x80] ss:$8 sps:$4 sm:$0xff]  }
 0x291   :  { %2626 = vmatprep.subr.bf16.mxu0 %v3469_v57  ;;  %2586 = vmatpush2.bf16.msra.mxu1 %v3518_v47  ;;  %v3535_v57 = vld [vmem:[#allocation10 + $0x274] ss:$8 sps:$4 sm:$0xff]  }
 0x292   :  { %2587 = vmatprep.subr.bf16.mxu1 %v3526_v51 }
 0x294   :  { %2627 = vmatpush1.bf16.msra.mxu0 %v3467_v60 }
 0x295   :  { %2628 = vmatprep.subr.bf16.mxu0 %v3475_v62  ;;  %2588 = vmatpush2.bf16.msra.mxu1 %v3524_v52 }
 0x296   :  { %2589 = vmatprep.subr.bf16.mxu1 %v3529_v53 }
 0x298   :  { %2629 = vmatpush1.bf16.msra.mxu0 %v3473_v2 }
 0x299   :  { %2630 = vmatprep.subr.bf16.mxu0 %v3481_v4  ;;  %2590 = vmatpush2.bf16.msra.mxu1 %v3527_v54  ;;  %v1254_v4 = vld [vmem:[%s4179_s6] sm:$0x3] }
 0x29a   :  { %2591 = vmatprep.subr.bf16.mxu1 %v3532_v56  ;;  %v1263_v0 = vrot.slane %v1254_v4, %v3806_v18 }
 0x29c   :  { %2631 = vmatpush2.bf16.msra.mxu0 %v3479_v8  ;;  %v1259_v8 = vrot.slane %v1254_v4, %v3809_v19 }
 0x29d   :  { %2632 = vmatprep.subr.bf16.mxu0 %v3487_v13  ;;  %2592 = vmatpush2.bf16.msra.mxu1 %v3530_v55 }
 0x29e   :  { %2667 = vmatprep.subr.bf16.mxu1 %v3535_v57 }
 0x2a0   :  { %2633 = vmatpush2.bf16.msra.mxu0 %v3485_v16 }
 0x2a1   :  { %2634 = vmatprep.subr.bf16.mxu0 %v3493_v5 }
 0x2a4   :  { %2635 = vmatpush2.bf16.msra.mxu0 %v3491_v22 }
 0x2a5   :  { %2636 = vmatprep.subr.bf16.mxu0 %v3499_v23 }
 0x2a8   :  { %2637 = vmatpush2.bf16.msra.mxu0 %v3497_v24 }
 0x2a9   :  { %2638 = vmatprep.subr.bf16.mxu0 %v3505_v25 }
 0x2ac   :  { %2639 = vmatpush2.bf16.msra.mxu0 %v3503_v27 }
 0x2ad   :  { %2640 = vmatprep.subr.bf16.mxu0 %v3511_v35 }
 0x2b0   :  { %2641 = vmatpush2.bf16.msra.mxu0 %v3509_v36 }
 0x2b1   :  { %2642 = vmatprep.subr.bf16.mxu0 %v3517_v42 }
 0x2b4   :  { %2643 = vmatpush2.bf16.msra.mxu0 %v3515_v44 }
 0x2b5   :  { %2644 = vmatprep.subr.bf16.mxu0 %v3523_v49 }
 0x2b8   :  { %2645 = vmatpush2.bf16.msra.mxu0 %v3521_v50 }
 0x2f0   :  { %v1833_v63 = vpop.f32.mrf.mxu1 }
 0x2f2   :  { %v1835_v3 = vpop.f32.mrf.mxu1 }
 0x2f4   :  { %v1837_v11 = vpop.f32.mrf.mxu1 }
 0x2f6   :  { %v1839_v16 = vpop.f32.mrf.mxu1 }
 0x2f8   :  { %v1843_v23 = vpop.f32.mrf.mxu1 }
 0x2fa   :  { %v1845_v36 = vpop.f32.mrf.mxu1 }
 0x2fb   :  { %v1780_v59 = vpop.f32.mrf.mxu0 }
 0x2fc   :  { %v1781_v14 = vadd.f32 %v1780_v59, %v1259_v8  ;;  %v1847_v55 = vpop.f32.mrf.mxu1 }
 0x2fd   :  { %v1782_v60 = vpop.f32.mrf.mxu0 }
 0x2fe   :  { %v1834_v22 = vadd.f32 %v1833_v63, %v1781_v14  ;;  %v1783_v24 = vadd.f32 %v1782_v60, %v1263_v0 }
 0x2ff   :  { %v1784_v61 = vpop.f32.mrf.mxu0 }
 0x300   :  { %v1785_v21 = vadd.f32 %v1784_v61, %v1259_v8  ;;  %v1836_v40 = vadd.f32 %v1835_v3, %v1783_v24 }
 0x301   :  { %v1786_v62 = vpop.f32.mrf.mxu0 }
 0x302   :  { %v1787_v27 = vadd.f32 %v1786_v62, %v1263_v0  ;;  %v1838_v35 = vadd.f32 %v1837_v11, %v1785_v21 }
 0x303   :  { %v1790_v2 = vpop.f32.mrf.mxu0 }
 0x304   :  { %v1791_v37 = vadd.f32 %v1790_v2, %v1259_v8  ;;  %v1840_v47 = vadd.f32 %v1839_v16, %v1787_v27 }
 0x305   :  { %v1792_v7 = vpop.f32.mrf.mxu0 }
 0x306   :  { %v1793_v49 = vadd.f32 %v1792_v7, %v1263_v0  ;;  %v1844_v56 = vadd.f32 %v1843_v23, %v1791_v37  ;;  %v1849_v7 = vpop.f32.mrf.mxu1 }
 0x307   :  { %v1794_v13 = vpop.f32.mrf.mxu0 }
 0x308   :  { %v1795_v52 = vadd.f32 %v1794_v13, %v1259_v8  ;;  %v1846_v2 = vadd.f32 %v1845_v36, %v1793_v49 }
 0x309   :  { %v1796_v5 = vpop.f32.mrf.mxu0 }
 0x30a   :  { %v1797_v59 = vadd.f32 %v1796_v5, %v1263_v0  ;;  %v1848_v4 = vadd.f32 %v1847_v55, %v1795_v52  ;;  %v3533_v52 = vld [vmem:[#allocation10 + $0x270] ss:$8 sps:$4 sm:$0xff]  }
 0x30c   :  { %v1850_v16 = vadd.f32 %v1849_v7, %v1797_v59 }
 0x33b   :  { %v1886_v25 = vpop.f32.mrf.mxu0 }
 0x33c   :  { %v1887_v31 = vadd.f32 %v1886_v25, %v1834_v22 }
 0x33d   :  { %v1888_v34 = vpop.f32.mrf.mxu0 }
 0x33e   :  { %v1905_v44 = vsub.f32 %v1887_v31, %v3822_v30  ;;  %v1889_v50 = vadd.f32 %v1888_v34, %v1836_v40 }
 0x33f   :  { %v1890_v42 = vpop.f32.mrf.mxu0 }
 0x340   :  { %v1891_v45 = vadd.f32 %v1890_v42, %v1838_v35  ;;  %v1937_v60 = vrot.slane %v1905_v44, 1  ;;  %v4059_v30 = vsub.f32 %v1889_v50, %v3818_v28 }
 0x341   :  { %v1892_v51 = vpop.f32.mrf.mxu0 }
 0x342   :  { %v4052_v53 = vsub.f32 %v1891_v45, %v3816_v26  ;;  %v1893_v54 = vadd.f32 %v1892_v51, %v1840_v47  ;;  %v1938_v7 = vrot.slane %v4059_v30, 1 }
 0x343   :  { %v1896_v57 = vpop.f32.mrf.mxu0 }
 0x344   :  { %v1939_v61 = vrot.slane %v4052_v53, 1  ;;  %v4056_v62 = vsub.f32 %v1893_v54, %v3820_v29  ;;  %v1897_v63 = vadd.f32 %v1896_v57, %v1844_v56  ;;  %v1963_v14 = vpack.c.bf16 %v4052_v53, %v1905_v44  ;;  %v3538_v56 = vld [vmem:[#allocation10 + $0x264] ss:$8 sps:$4 sm:$0xff]  }
 0x345   :  { %v1898_v3 = vpop.f32.mrf.mxu0  ;;  %v1915_v35 = vrot.slane %v4052_v53, 7 }
 0x346   :  { %v4063_v26 = vsel %vm322_vm7, %v1937_v60, %v1939_v61  ;;  %v1909_v8 = vsub.f32 %v1897_v63, %v3845_v48  ;;  %v1899_v11 = vadd.f32 %v1898_v3, %v1846_v2  ;;  %v1964_v29 = vpack.c.bf16 %v4056_v62, %v4059_v30  ;;  %v3536_v63 = vld [vmem:[#allocation10 + $0x260] ss:$8 sps:$4 sm:$0xff]   ;;  %v3541_v3 = vld [vmem:[#allocation10 + $0x254] ss:$8 sps:$4 sm:$0xff]  }
 0x347   :  { %v1900_v13 = vpop.f32.mrf.mxu0  ;;  %v1916_v48 = vrot.slane %v4056_v62, 7  ;;  %v1940_v2 = vrot.slane %v4056_v62, 1 }
 0x348   :  { %v1901_v28 = vadd.f32 %v1900_v13, %v1848_v4  ;;  %v1941_v0 = vrot.slane %v1909_v8, 1  ;;  %2646 = vmatprep.mubr.bf16.mxu0 %v1964_v29  ;;  %v4070_v21 = vsub.f32 %v1899_v11, %v3830_v38  ;;  %v1913_v38 = vrot.slane %v1905_v44, 7  ;;  %v3544_v29 = vld [vmem:[#allocation10 + $0x244] ss:$8 sps:$4 sm:$0xff]  }
 0x349   :  { %v1902_v5 = vpop.f32.mrf.mxu0  ;;  %2647 = vmatmul.mubr.bf16.vlgmr.msra.gmra.mxu0 %v1963_v14  ;;  %v1950_v62 = vsel %vm322_vm7, %v1938_v7, %v1940_v2 }
 0x34a   :  { %v1911_v22 = vsub.f32 %v1901_v28, %v3832_v39  ;;  %v1903_v23 = vadd.f32 %v1902_v5, %v1850_v16  ;;  %v4076_v24 = vsel %vm322_vm7, %v1939_v61, %v1941_v0  ;;  %v1914_v39 = vrot.slane %v4059_v30, 7  ;;  %v3542_v28 = vld [vmem:[#allocation10 + $0x240] ss:$8 sps:$4 sm:$0xff]   ;;  %v3547_v16 = vld [vmem:[#allocation10 + $0x234] ss:$8 sps:$4 sm:$0xff]  }
 0x34b   :  { %v3117_v25 = vpack.c.bf16 %v4076_v24, %v4063_v26  ;;  %v1918_v36 = vrot.slane %v4070_v21, 7  ;;  %v1925_v50 = vsel %vm297_vm1, %v1913_v38, %v1915_v35  ;;  %v1942_v61 = vrot.slane %v4070_v21, 1  ;;  %v3550_v5 = vld [vmem:[#allocation10 + $0x224] ss:$8 sps:$4 sm:$0xff]  }
 0x34c   :  { %v1919_v27 = vrot.slane %v1911_v22, 7  ;;  %v1943_v31 = vrot.slane %v1911_v22, 1  ;;  %v4081_v34 = vsub.f32 %v1903_v23, %v3836_v43  ;;  %v1969_v43 = vpack.c.bf16 %v1911_v22, %v1909_v8  ;;  %v3548_v22 = vld [vmem:[#allocation10 + $0x220] ss:$8 sps:$4 sm:$0xff]   ;;  %v3553_v23 = vld [vmem:[#allocation10 + $0x214] ss:$8 sps:$4 sm:$0xff]  }
 0x34d   :  { %v1926_v44 = vsel %vm297_vm1, %v1914_v39, %v1916_v48  ;;  %v1924_v55 = vsel %vm297_vm1, %v1916_v48, %v1918_v36  ;;  %v1948_v58 = vsel %vm322_vm7, %v1940_v2, %v1942_v61  ;;  %v3551_v48 = vld [vmem:[#allocation10 + $0x210] ss:$8 sps:$4 sm:$0xff]   ;;  %v2074_v24 = vrot.slane %v2069_v20, %v3809_v19 }
 0x34e   :  { %v1920_v37 = vrot.slane %v4081_v34, 7  ;;  %v1970_v40 = vpack.c.bf16 %v4081_v34, %v4070_v21  ;;  %v1927_v42 = vsel %vm297_vm1, %v1919_v27, %v1913_v38  ;;  %v4093_v45 = vsel %vm322_vm7, %v1941_v0, %v1943_v31  ;;  %v3545_v0 = vld [vmem:[#allocation10 + $0x230] ss:$8 sps:$4 sm:$0xff]  }
 0x34f   :  { %v4105_v53 = vsel %vm322_vm7, %v1943_v31, %v1937_v60  ;;  %v3105_v54 = vpack.c.bf16 %v1925_v50, %v1927_v42  ;;  %v1917_v60 = vrot.slane %v1909_v8, 7  ;;  %v3539_v8 = vld [vmem:[#allocation10 + $0x250] ss:$8 sps:$4 sm:$0xff]   ;;  %v3114_v14 = vpack.c.bf16 %v1948_v58, %v1950_v62  ;;  %v3559_v31 = vld [vmem:[#allocation10 + $0x2f4] ss:$8 sps:$4 sm:$0xff]  }
 0x350   :  { %2656 = vmatprep.mubr.bf16.mxu0 %v1970_v40  ;;  %v1928_v47 = vsel %vm297_vm1, %v1920_v37, %v1914_v39  ;;  %v1922_v49 = vsel %vm297_vm1, %v1918_v36, %v1920_v37  ;;  %v3123_v57 = vpack.c.bf16 %v4105_v53, %v4093_v45  ;;  %v3557_v38 = vld [vmem:[#allocation10 + $0x2f0] ss:$8 sps:$4 sm:$0xff]   ;;  %v3560_v39 = vld [vmem:[#allocation10 + $0x2e0] ss:$8 sps:$4 sm:$0xff]   ;;  %v3565_v36 = vld [vmem:[#allocation10 + $0x2d4] ss:$8 sps:$4 sm:$0xff]   ;;  %v2078_v45 = vrot.slane %v2069_v20, %v3806_v18 }
 0x351   :  { %v3102_v51 = vpack.c.bf16 %v1926_v44, %v1928_v47  ;;  %2657 = vmatmul.mubr.bf16.gmra.mxu0 %v1969_v43  ;;  %v3108_v59 = vpack.c.bf16 %v1922_v49, %v1924_v55  ;;  %v1921_v4 = vsel %vm297_vm1, %v1917_v60, %v1919_v27  ;;  %v1923_v11 = vsel %vm297_vm1, %v1915_v35, %v1917_v60  ;;  %v3554_v27 = vld [vmem:[#allocation10 + $0x200] ss:$8 sps:$4 sm:$0xff]   ;;  %v3562_v35 = vld [vmem:[#allocation10 + $0x2e4] ss:$8 sps:$4 sm:$0xff]   ;;  %v3563_v37 = vld [vmem:[#allocation10 + $0x2d0] ss:$8 sps:$4 sm:$0xff]  }
 0x352   :  { %v3111_v13 = vpack.c.bf16 %v1921_v4, %v1923_v11  ;;  %v3568_v40 = vld [vmem:[#allocation10 + $0x2c4] ss:$8 sps:$4 sm:$0xff]   ;;  %v3566_v42 = vld [vmem:[#allocation10 + $0x2c0] ss:$8 sps:$4 sm:$0xff]   ;;  %v3571_v43 = vld [vmem:[#allocation10 + $0x2b4] ss:$8 sps:$4 sm:$0xff]  }
 0x353   :  { %3103 = vmatprep.mubr.msk.bf16.mxu1 %vm3864_vm5, %v3102_v51  ;;  %v3569_v44 = vld [vmem:[#allocation10 + $0x2b0] ss:$8 sps:$4 sm:$0xff]   ;;  %v3574_v47 = vld [vmem:[#allocation10 + $0x2a4] ss:$8 sps:$4 sm:$0xff]   ;;  %v3572_v49 = vld [vmem:[#allocation10 + $0x2a0] ss:$8 sps:$4 sm:$0xff]  }
 0x354   :  { %3106 = vmatmul.mubr.msk.bf16.vlgmr.msra.gmra.mxu1 %vm3864_vm5, %v3105_v54  ;;  %v3577_v50 = vld [vmem:[#allocation10 + $0x294] ss:$8 sps:$4 sm:$0xff]   ;;  %v3575_v51 = vld [vmem:[#allocation10 + $0x290] ss:$8 sps:$4 sm:$0xff]   ;;  %v1944_v54 = vrot.slane %v4081_v34, 1 }
 0x355   :  { %2668 = vmatpush1.bf16.msra.mxu1 %v3533_v52  ;;  %3109 = vmatprep.mubr.msk.bf16.mxu1 %vm3875_vm6, %v3108_v59  ;;  %v3580_v52 = vld [vmem:[#allocation10 + $0x284] ss:$8 sps:$4 sm:$0xff]   ;;  %v3578_v55 = vld [vmem:[#allocation10 + $0x280] ss:$8 sps:$4 sm:$0xff]  }
 0x356   :  { %2669 = vmatprep.subr.bf16.mxu1 %v3538_v56  ;;  %v1946_v56 = vsel %vm322_vm7, %v1942_v61, %v1944_v54  ;;  %v1952_v59 = vsel %vm322_vm7, %v1944_v54, %v1938_v7 }
 0x357   :  { %v3120_v60 = vpack.c.bf16 %v1952_v59, %v1946_v56 }
 0x359   :  { %2670 = vmatpush1.bf16.msra.mxu1 %v3536_v63 }
 0x35a   :  { %2671 = vmatprep.subr.bf16.mxu1 %v3541_v3 }
 0x35c   :  { %3112 = vmatmul.mubr.msk.bf16.gmra.mxu1 %vm3875_vm6, %v3111_v13 }
 0x35d   :  { %2672 = vmatpush1.bf16.msra.mxu1 %v3539_v8  ;;  %3115 = vmatprep.mubr.msk.bf16.mxu1 %vm3903_vm9, %v3114_v14 }
 0x35e   :  { %2673 = vmatprep.subr.bf16.mxu1 %v3544_v29 }
 0x361   :  { %2674 = vmatpush1.bf16.msra.mxu1 %v3542_v28 }
 0x362   :  { %2675 = vmatprep.subr.bf16.mxu1 %v3547_v16 }
 0x365   :  { %2676 = vmatpush1.bf16.msra.mxu1 %v3545_v0 }
 0x366   :  { %2677 = vmatprep.subr.bf16.mxu1 %v3550_v5 }
 0x369   :  { %2678 = vmatpush1.bf16.msra.mxu1 %v3548_v22 }
 0x36a   :  { %2679 = vmatprep.subr.bf16.mxu1 %v3553_v23 }
 0x36d   :  { %2680 = vmatpush1.bf16.msra.mxu1 %v3551_v48 }
 0x36e   :  { %2681 = vmatprep.subr.bf16.mxu1 %v3556_v1 }
 0x371   :  { %2682 = vmatpush1.bf16.msra.mxu1 %v3554_v27 }
 0x372   :  { %2683 = vmatprep.subr.bf16.mxu1 %v3559_v31 }
 0x375   :  { %2684 = vmatpush2.bf16.msra.mxu1 %v3557_v38 }
 0x376   :  { %2685 = vmatprep.subr.bf16.mxu1 %v3562_v35 }
 0x379   :  { %2686 = vmatpush2.bf16.msra.mxu1 %v3560_v39 }
 0x37a   :  { %2687 = vmatprep.subr.bf16.mxu1 %v3565_v36 }
 0x37d   :  { %2688 = vmatpush2.bf16.msra.mxu1 %v3563_v37 }
 0x37e   :  { %2689 = vmatprep.subr.bf16.mxu1 %v3568_v40 }
 0x381   :  { %2690 = vmatpush2.bf16.msra.mxu1 %v3566_v42 }
 0x382   :  { %2691 = vmatprep.subr.bf16.mxu1 %v3571_v43 }
 0x385   :  { %2692 = vmatpush2.bf16.msra.mxu1 %v3569_v44 }
 0x386   :  { %2693 = vmatprep.subr.bf16.mxu1 %v3574_v47 }
 0x389   :  { %2694 = vmatpush2.bf16.msra.mxu1 %v3572_v49 }
 0x38a   :  { %2695 = vmatprep.subr.bf16.mxu1 %v3577_v50 }
 0x38d   :  { %2696 = vmatpush2.bf16.msra.mxu1 %v3575_v51 }
 0x38e   :  { %2697 = vmatprep.subr.bf16.mxu1 %v3580_v52 }
 0x391   :  { %2698 = vmatpush2.bf16.msra.mxu1 %v3578_v55 }
 0x394   :  { %3118 = vmatmul.mubr.msk.bf16.vlgmr.msra.gmra.mxu1 %vm3903_vm9, %v3117_v25 }
 0x395   :  { %3121 = vmatprep.mubr.msk.bf16.mxu1 %vm3929_vm11, %v3120_v60 }
 0x39c   :  { %3124 = vmatmul.mubr.msk.bf16.gmra.mxu1 %vm3929_vm11, %v3123_v57 }
 0x409   :  { %v2648_v61 = vpop.f32.mrf.mxu0 }
 0x40b   :  { %v2650_v2 = vpop.f32.mrf.mxu0 }
 0x40d   :  { %v2652_v25 = vpop.f32.mrf.mxu0 }
 0x40f   :  { %v2654_v57 = vpop.f32.mrf.mxu0 }
 0x411   :  { %v2658_v8 = vpop.f32.mrf.mxu0 }
 0x413   :  { %v2660_v5 = vpop.f32.mrf.mxu0 }
 0x414   :  { %v2595_v30 = vpop.f32.mrf.mxu1 }
 0x415   :  { %v2596_v6 = vadd.f32 %v2595_v30, %v2074_v24  ;;  %v2662_v36 = vpop.f32.mrf.mxu0 }
 0x416   :  { %v2597_v17 = vpop.f32.mrf.mxu1 }
 0x417   :  { %v2598_v3 = vadd.f32 %v2597_v17, %v2078_v45  ;;  %v2649_v58 = vadd.f32 %v2648_v61, %v2596_v6  ;;  %v2664_v50 = vpop.f32.mrf.mxu0 }
 0x418   :  { %v2599_v21 = vpop.f32.mrf.mxu1 }
 0x419   :  { %v2600_v7 = vadd.f32 %v2599_v21, %v2074_v24  ;;  %v2651_v29 = vadd.f32 %v2650_v2, %v2598_v3 }
 0x41a   :  { %v2601_v34 = vpop.f32.mrf.mxu1 }
 0x41b   :  { %v2602_v13 = vadd.f32 %v2601_v34, %v2078_v45  ;;  %v2653_v0 = vadd.f32 %v2652_v25, %v2600_v7 }
 0x41c   :  { %v2605_v63 = vpop.f32.mrf.mxu1 }
 0x41d   :  { %v2606_v28 = vadd.f32 %v2605_v63, %v2074_v24  ;;  %v2655_v1 = vadd.f32 %v2654_v57, %v2602_v13 }
 0x41e   :  { %v2607_v26 = vpop.f32.mrf.mxu1 }
 0x41f   :  { %v2608_v22 = vadd.f32 %v2607_v26, %v2078_v45  ;;  %v2659_v39 = vadd.f32 %v2658_v8, %v2606_v28 }
 0x420   :  { %v2609_v53 = vpop.f32.mrf.mxu1 }
 0x421   :  { %v2610_v31 = vadd.f32 %v2609_v53, %v2074_v24  ;;  %v2661_v43 = vadd.f32 %v2660_v5, %v2608_v22 }
 0x422   :  { %v2611_v4 = vpop.f32.mrf.mxu1 }
 0x423   :  { %v2663_v49 = vadd.f32 %v2662_v36, %v2610_v31 }
 0x454   :  { %v2701_v11 = vpop.f32.mrf.mxu1 }
 0x455   :  { %v2702_v62 = vadd.f32 %v2701_v11, %v2649_v58 }
 0x456   :  { %v2703_v14 = vpop.f32.mrf.mxu1 }
 0x457   :  { %v2720_v16 = vadd.f32 %v2702_v62, %v3955_v15  ;;  %v2704_v19 = vadd.f32 %v2703_v14, %v2651_v29  ;;  %v2612_v15 = vadd.f32 %v2611_v4, %v2078_v45 }
 0x458   :  { %v2705_v18 = vpop.f32.mrf.mxu1 }
 0x459   :  { %2728 = vst [vmem:[#allocation11] sm:$0xff] %v2720_v16  ;;  %v2721_v23 = vadd.f32 %v2704_v19, %v3953_v12  ;;  %v2706_v48 = vadd.f32 %v2705_v18, %v2653_v0  ;;  %v2665_v54 = vadd.f32 %v2664_v50, %v2612_v15 }
 0x45a   :  { %v2707_v27 = vpop.f32.mrf.mxu1 }
 0x45b   :  { %2729 = vst [vmem:[#allocation11 + $0x8] sm:$0xff] %v2721_v23  ;;  %v2722_v38 = vadd.f32 %v2706_v48, %v3949_v9  ;;  %v2708_v35 = vadd.f32 %v2707_v27, %v2655_v1 }
 0x45c   :  { %v2711_v37 = vpop.f32.mrf.mxu1 }
 0x45d   :  { %2730 = vst [vmem:[#allocation11 + $0x10] sm:$0xff] %v2722_v38  ;;  %v2723_v40 = vadd.f32 %v2708_v35, %v3951_v10  ;;  %v2712_v42 = vadd.f32 %v2711_v37, %v2659_v39 }
 0x45e   :  { %v2713_v44 = vpop.f32.mrf.mxu1 }
 0x45f   :  { %2731 = vst [vmem:[#allocation11 + $0x18] sm:$0xff] %v2723_v40  ;;  %v2724_v12 = vadd.f32 %v2712_v42, %v3972_v46  ;;  %v2714_v47 = vadd.f32 %v2713_v44, %v2661_v43 }
 0x460   :  { %v2715_v51 = vpop.f32.mrf.mxu1 }
 0x461   :  { %2732 = vst [vmem:[#allocation11 + $0x20] sm:$0xff] %v2724_v12  ;;  %v2725_v9 = vadd.f32 %v2714_v47, %v3961_v32  ;;  %v2716_v52 = vadd.f32 %v2715_v51, %v2663_v49 }
 0x462   :  { %v2717_v55 = vpop.f32.mrf.mxu1 }
 0x463   :  { %2733 = vst [vmem:[#allocation11 + $0x28] sm:$0xff] %v2725_v9  ;;  %v2726_v10 = vadd.f32 %v2716_v52, %v3963_v33  ;;  %v2718_v56 = vadd.f32 %v2717_v55, %v2665_v54 }
 0x465   :  { %2734 = vst [vmem:[#allocation11 + $0x30] sm:$0xff] %v2726_v10  ;;  %v2727_v59 = vadd.f32 %v2718_v56, %v3967_v41 }
 0x467   :  { %2735 = vst [vmem:[#allocation11 + $0x38] sm:$0xff] %v2727_v59 }
 0x468   :  { %3692 = shalt.err (!%p3689_p1)
}
 0x469   :  { %s3719_s17 = smov 256   ;;  %s3720_s18 = smov 16  }
 0x46a   :  { %2747 = dma.vmem_to_hbm [thread:$0]  %s2742_s15, 1024, %s4182_s9, [#allocation4], %s3719_s17, %s3719_s17, %s3720_s18  }
 0x46b   :  { %3707 = dma.done.wait [#allocation4], 1024  }
 0x46c   :  { %3708 = vsyncadd [#allocation4], 4294966272 }
 0x46d   :  { %2751 = vsyncpa [#allocation3], 1 }
 0x46e   :  { %2752 = vsyncpa [#allocation6], 1 }
 0x46f   :  { %2753 = vsyncpa [#allocation9], 1 }
 0x470   :  { %2754 = vsyncpa [#allocation4], 1 }

</bundles_post_ra>
